<compile_context>
chip_gen: v5e
topology: v5e:2x2
jax: 0.10.0
libtpu: 0.0.40
codegen_flags: <defaults>
</compile_context>

<pallas_src>
import functools

import jax
import jax.numpy as jnp
from jax import lax
from jax.experimental import pallas as pl
from jax.experimental.pallas import tpu as pltpu


def _round_up(x, m):
    return (x + m - 1) // m * m


# ----------------------------------------------------------------------------
# Fused RDB kernel (one batch element per grid step)
# ----------------------------------------------------------------------------
def _rdb_fused_kernel(x_ref, w_all_ref, b_all_ref, lff_w_ref, lff_b_ref,
                      o_ref, feat_ref, slab_ref,
                      *, C, G0, G, H, W, CROWS, LPAD):
    # x_ref     : (1, G0, H*W)       input block (channels x flattened pixels)
    # w_all_ref : (C, G, 9*CROWS)    packed per-layer 3x3 weights (zero padded)
    # b_all_ref : (C, G, 1)          per-layer biases
    # lff_w_ref : (G0, CROWS)        packed 1x1 LFF weights (zero padded)
    # lff_b_ref : (G0, 1)
    # o_ref     : (1, G0, H*W)
    # feat_ref  : (CROWS, LPAD + H*W + LPAD)  VMEM dense-feature buffer
    # slab_ref  : (9*CROWS, H*W)              VMEM im2col slab
    HW = H * W

    # Zero the feature buffer: its flat-padding lanes implement the conv's
    # spatial zero padding, and not-yet-written channel rows must read as 0.
    feat_ref[...] = jnp.zeros_like(feat_ref)

    # Residual-branch input -> first G0 rows of the (lane-aligned) live window.
    feat_ref[0:G0, LPAD:LPAD + HW] = x_ref[0].astype(jnp.float32)

    # Lane masks for the horizontal (dx) taps: a flat shift by +-1 wraps across
    # image rows, so wrapped lanes must be zeroed.
    col = lax.broadcasted_iota(jnp.int32, (1, HW), 1) % W
    not_left = col > 0          # valid lanes when reading x-1
    not_right = col < (W - 1)   # valid lanes when reading x+1

    for c in range(C):
        cin = G0 + c * G        # valid input channels this layer (rest are 0)

        # Build the im2col slab: 9 shifted copies of the feature buffer.
        for dy in range(3):
            for dx in range(3):
                t = dy * 3 + dx
                off = (dy - 1) * W + (dx - 1)
                tap = feat_ref[:, LPAD + off:LPAD + off + HW]   # (CROWS, HW)
                if dx == 0:
                    tap = jnp.where(not_left, tap, 0.0)
                elif dx == 2:
                    tap = jnp.where(not_right, tap, 0.0)
                slab_ref[t * CROWS:(t + 1) * CROWS, :] = tap

        # One wide-K MXU matmul per conv layer: (G, 9*CROWS) @ (9*CROWS, HW).
        y = jnp.dot(w_all_ref[c], slab_ref[...],
                    preferred_element_type=jnp.float32)
        y = jnp.maximum(y + b_all_ref[c], 0.0)                  # bias + ReLU

        # "Concat": append the G new channels to the dense-feature buffer.
        feat_ref[cin:cin + G, LPAD:LPAD + HW] = y

    # 1x1 LFF over all dense features + residual add, written lane-dense.
    full = feat_ref[:, LPAD:LPAD + HW]                          # (CROWS, HW)
    out = jnp.dot(lff_w_ref[...], full, preferred_element_type=jnp.float32)
    out = out + lff_b_ref[...] + x_ref[0].astype(jnp.float32)
    o_ref[0] = out.astype(o_ref.dtype)


# ----------------------------------------------------------------------------
# Wrapper: weight packing + pallas_call plumbing (works directly on NCHW)
# ----------------------------------------------------------------------------
def rdb_forward(params, x_nchw):
    """RDB forward. x_nchw: (N, G0, H, W) -> (N, G0, H, W)  (PyTorch layout)."""
    N, G0, H, W = x_nchw.shape
    convs = params["convs"]
    C = len(convs)
    G = convs[0][0].shape[-1]
    Ctot = G0 + C * G
    HW = H * W
    CROWS = _round_up(Ctot, 8)   # channel rows padded -> aligned sublane slices
    LPAD = 128                   # flat spatial pad; keeps live window vreg-aligned
    assert W + 1 <= LPAD

    # ---- pack parameters for the (channels, pixels) transposed layout -------
    w_all = jnp.zeros((C, G, 9 * CROWS), jnp.float32)
    b_all = jnp.zeros((C, G, 1), jnp.float32)
    for c, (w, b) in enumerate(convs):            # w: (3, 3, Cin, G) HWIO
        cin = w.shape[2]
        wp = jnp.transpose(w, (3, 0, 1, 2)).reshape(G, 9, cin)   # [g, tap, ci]
        wp = jnp.pad(wp, ((0, 0), (0, 0), (0, CROWS - cin)))
        w_all = w_all.at[c].set(wp.reshape(G, 9 * CROWS))
        b_all = b_all.at[c].set(b.reshape(G, 1))
    lff_w = jnp.pad(params["lff_w"].T, ((0, 0), (0, CROWS - Ctot)))  # (G0,CROWS)
    lff_b = params["lff_b"].reshape(G0, 1)

    x_flat = x_nchw.reshape(N, G0, HW)            # lane-dense, no transpose

    kernel = functools.partial(
        _rdb_fused_kernel, C=C, G0=G0, G=G, H=H, W=W, CROWS=CROWS, LPAD=LPAD)

    out_flat = pl.pallas_call(
        kernel,
        out_shape=jax.ShapeDtypeStruct((N, G0, HW), x_nchw.dtype),
        grid=(N,),
        in_specs=[
            pl.BlockSpec((1, G0, HW), lambda n: (n, 0, 0)),
            pl.BlockSpec((C, G, 9 * CROWS), lambda n: (0, 0, 0)),
            pl.BlockSpec((C, G, 1), lambda n: (0, 0, 0)),
            pl.BlockSpec((G0, CROWS), lambda n: (0, 0)),
            pl.BlockSpec((G0, 1), lambda n: (0, 0)),
        ],
        out_specs=pl.BlockSpec((1, G0, HW), lambda n: (n, 0, 0)),
        scratch_shapes=[
            pltpu.VMEM((CROWS, LPAD + HW + LPAD), jnp.float32),  # feature buffer
            pltpu.VMEM((9 * CROWS, HW), jnp.float32),            # im2col slab
        ],
        compiler_params=pltpu.CompilerParams(
            dimension_semantics=("parallel",)),
    )(x_flat, w_all, b_all, lff_w, lff_b)

    return out_flat.reshape(N, G0, H, W)


# ----------------------------------------------------------------------------
# Parameter init (matches the PyTorch module's shapes) + pure-JAX reference
# ----------------------------------------------------------------------------
def init_rdb_params(key, G0, G, C):
    params = {"convs": []}
    for c in range(C):
        cin = G0 + c * G
        key, kw, kb = jax.random.split(key, 3)
        w = jax.random.normal(kw, (3, 3, cin, G), jnp.float32) * 0.1   # HWIO
        b = jax.random.normal(kb, (G,), jnp.float32) * 0.1
        params["convs"].append((w, b))
    Ctot = G0 + C * G
    key, kw, kb = jax.random.split(key, 3)
    params["lff_w"] = jax.random.normal(kw, (Ctot, G0), jnp.float32) * 0.1
    params["lff_b"] = jax.random.normal(kb, (G0,), jnp.float32) * 0.1
    return params


def rdb_reference(params, x_nhwc):
    dn = lax.conv_dimension_numbers(x_nhwc.shape, (3, 3, 1, 1),
                                    ("NHWC", "HWIO", "NHWC"))
    feat = x_nhwc
    for (w, b) in params["convs"]:
        y = lax.conv_general_dilated(feat, w, (1, 1), "SAME",
                                     dimension_numbers=dn)
        y = jnp.maximum(y + b[None, None, None, :], 0.0)
        feat = jnp.concatenate([feat, y], axis=-1)
    lff_w = params["lff_w"].reshape(1, 1, *params["lff_w"].shape)
    dn1 = lax.conv_dimension_numbers(feat.shape, lff_w.shape,
                                     ("NHWC", "HWIO", "NHWC"))
    y = lax.conv_general_dilated(feat, lff_w, (1, 1), "VALID",
                                 dimension_numbers=dn1)
    return y + params["lff_b"][None, None, None, :] + x_nhwc


# ----------------------------------------------------------------------------
if __name__ == "__main__":
    # RDB(growRate0=4, growRate=4, nConvLayers=3), input (N=2, C=4, H=16, W=16)
    G0, G, C = 4, 4, 3
    N, H, W = 2, 16, 16

    key = jax.random.PRNGKey(0)
    key, kx = jax.random.split(key)
    x_nchw = jax.random.normal(kx, (N, G0, H, W), jnp.float32)  # PyTorch layout
    params = init_rdb_params(key, G0, G, C)

    out_nchw = jax.jit(rdb_forward)(params, x_nchw)
    jax.block_until_ready(out_nchw)

    # correctness check against pure-JAX reference
    x_nhwc = jnp.transpose(x_nchw, (0, 2, 3, 1))
    ref_nchw = jnp.transpose(rdb_reference(params, x_nhwc), (0, 3, 1, 2))
    assert out_nchw.shape == (N, G0, H, W)
    assert jnp.allclose(out_nchw, ref_nchw, rtol=1e-3, atol=1e-3), \
        float(jnp.max(jnp.abs(out_nchw - ref_nchw)))

    print("KERNEL_OK")
</pallas_src>

<mosaic_0001>
module attributes {stable_mosaic.version = 11 : i64} {
  func.func @_rdb_fused_kernel(%arg0: i32, %arg1: memref<1x4x256xf32, #tpu.memory_space<vmem>>, %arg2: memref<3x4x144xf32, #tpu.memory_space<vmem>>, %arg3: memref<3x4x1xf32, #tpu.memory_space<vmem>>, %arg4: memref<4x16xf32, #tpu.memory_space<vmem>>, %arg5: memref<4x1xf32, #tpu.memory_space<vmem>>, %arg6: memref<1x4x256xf32, #tpu.memory_space<vmem>>, %arg7: memref<16x512xf32, #tpu.memory_space<vmem>>, %arg8: memref<144x256xf32, #tpu.memory_space<vmem>>) attributes {dimension_semantics = [#tpu.dimension_semantics<parallel>], iteration_bounds = array<i64: 2>, scalar_prefetch = 0 : i64, scratch_operands = 2 : i64, tpu.core_type = #tpu.core_type<tc>, window_params = [{transform_indices = @transform_0, window_bounds = array<i64: 1, 4, 256>}, {pipeline_mode = #tpu.pipeline_mode<synchronous>, transform_indices = @transform_1, window_bounds = array<i64: 3, 4, 144>}, {pipeline_mode = #tpu.pipeline_mode<synchronous>, transform_indices = @transform_2, window_bounds = array<i64: 3, 4, 1>}, {pipeline_mode = #tpu.pipeline_mode<synchronous>, transform_indices = @transform_3, window_bounds = array<i64: 4, 16>}, {pipeline_mode = #tpu.pipeline_mode<synchronous>, transform_indices = @transform_4, window_bounds = array<i64: 4, 1>}, {transform_indices = @transform_5, window_bounds = array<i64: 1, 4, 256>}]} {
    %cst = arith.constant 0.000000e+00 : f32
    %0 = vector.broadcast %cst : f32 to vector<16x512xf32>
    %c0 = arith.constant 0 : index
    %c0_0 = arith.constant 0 : index
    %1 = vector.load %arg7[%c0, %c0_0] : memref<16x512xf32, #tpu.memory_space<vmem>>, vector<16x512xf32>
    tpu.vector_store %arg7[%c0, %c0_0], %0 {strides = array<i32>} : memref<16x512xf32, #tpu.memory_space<vmem>>, vector<16x512xf32>,
    %c0_1 = arith.constant 0 : index
    %c0_2 = arith.constant 0 : index
    %c0_3 = arith.constant 0 : index
    %2 = vector.load %arg1[%c0_1, %c0_2, %c0_3] : memref<1x4x256xf32, #tpu.memory_space<vmem>>, vector<1x4x256xf32>
    %3 = vector.shape_cast %2 : vector<1x4x256xf32> to vector<4x256xf32>
    %c0_4 = arith.constant 0 : index
    %c128 = arith.constant 128 : index
    %4 = vector.load %arg7[%c0_4, %c128] : memref<16x512xf32, #tpu.memory_space<vmem>>, vector<4x256xf32>
    tpu.vector_store %arg7[%c0_4, %c128], %3 {strides = array<i32>} : memref<16x512xf32, #tpu.memory_space<vmem>>, vector<4x256xf32>,
    %5 = tpu.iota {dimensions = array<i32: 1>} : vector<1x256xi32>
    %c16_i32 = arith.constant 16 : i32
    %c0_i32 = arith.constant 0 : i32
    %6 = arith.cmpi eq, %c16_i32, %c0_i32 : i32
    %c1_i32 = arith.constant 1 : i32
    %7 = arith.select %6, %c1_i32, %c16_i32 : i32
    %8 = vector.broadcast %7 : i32 to vector<1x256xi32>
    %9 = arith.remsi %5, %8 : vector<1x256xi32>
    %c0_i32_5 = arith.constant 0 : i32
    %10 = vector.broadcast %c0_i32_5 : i32 to vector<1x256xi32>
    %11 = arith.cmpi ne, %9, %10 : vector<1x256xi32>
    %c0_i32_6 = arith.constant 0 : i32
    %12 = vector.broadcast %c0_i32_6 : i32 to vector<1x256xi32>
    %13 = arith.cmpi slt, %9, %12 : vector<1x256xi32>
    %c0_i32_7 = arith.constant 0 : i32
    %14 = arith.cmpi slt, %7, %c0_i32_7 : i32
    %15 = vector.broadcast %14 : i1 to vector<1x256xi1>
    %16 = vector.broadcast %15 : vector<1x256xi1> to vector<1x256xi1>
    %17 = arith.xori %13, %16 : vector<1x256xi1>
    %18 = arith.andi %17, %11 : vector<1x256xi1>
    %19 = vector.broadcast %7 : i32 to vector<1x256xi32>
    %20 = arith.addi %9, %19 : vector<1x256xi32>
    %21 = arith.select %18, %20, %9 : vector<1x256xi1>, vector<1x256xi32>
    %c0_i32_8 = arith.constant 0 : i32
    %22 = vector.broadcast %c0_i32_8 : i32 to vector<1x256xi32>
    %23 = arith.cmpi sgt, %21, %22 : vector<1x256xi32>
    %c15_i32 = arith.constant 15 : i32
    %24 = vector.broadcast %c15_i32 : i32 to vector<1x256xi32>
    %25 = arith.cmpi slt, %21, %24 : vector<1x256xi32>
    %c0_9 = arith.constant 0 : index
    %c111 = arith.constant 111 : index
    %26 = vector.load %arg7[%c0_9, %c111] : memref<16x512xf32, #tpu.memory_space<vmem>>, vector<16x256xf32>
    %cst_10 = arith.constant 0.000000e+00 : f32
    %27 = vector.shape_cast %23 : vector<1x256xi1> to vector<1x256xi1>
    %28 = vector.broadcast %27 : vector<1x256xi1> to vector<16x256xi1>
    %29 = vector.broadcast %cst_10 : f32 to vector<16x256xf32>
    %30 = arith.select %28, %26, %29 : vector<16x256xi1>, vector<16x256xf32>
    %c0_11 = arith.constant 0 : index
    %c0_12 = arith.constant 0 : index
    %31 = vector.load %arg8[%c0_11, %c0_12] : memref<144x256xf32, #tpu.memory_space<vmem>>, vector<16x256xf32>
    tpu.vector_store %arg8[%c0_11, %c0_12], %30 {strides = array<i32>} : memref<144x256xf32, #tpu.memory_space<vmem>>, vector<16x256xf32>,
    %c0_13 = arith.constant 0 : index
    %c112 = arith.constant 112 : index
    %32 = vector.load %arg7[%c0_13, %c112] : memref<16x512xf32, #tpu.memory_space<vmem>>, vector<16x256xf32>
    %c16 = arith.constant 16 : index
    %c0_14 = arith.constant 0 : index
    %33 = vector.load %arg8[%c16, %c0_14] : memref<144x256xf32, #tpu.memory_space<vmem>>, vector<16x256xf32>
    tpu.vector_store %arg8[%c16, %c0_14], %32 {strides = array<i32>} : memref<144x256xf32, #tpu.memory_space<vmem>>, vector<16x256xf32>,
    %c0_15 = arith.constant 0 : index
    %c113 = arith.constant 113 : index
    %34 = vector.load %arg7[%c0_15, %c113] : memref<16x512xf32, #tpu.memory_space<vmem>>, vector<16x256xf32>
    %cst_16 = arith.constant 0.000000e+00 : f32
    %35 = vector.shape_cast %25 : vector<1x256xi1> to vector<1x256xi1>
    %36 = vector.broadcast %35 : vector<1x256xi1> to vector<16x256xi1>
    %37 = vector.broadcast %cst_16 : f32 to vector<16x256xf32>
    %38 = arith.select %36, %34, %37 : vector<16x256xi1>, vector<16x256xf32>
    %c32 = arith.constant 32 : index
    %c0_17 = arith.constant 0 : index
    %39 = vector.load %arg8[%c32, %c0_17] : memref<144x256xf32, #tpu.memory_space<vmem>>, vector<16x256xf32>
    tpu.vector_store %arg8[%c32, %c0_17], %38 {strides = array<i32>} : memref<144x256xf32, #tpu.memory_space<vmem>>, vector<16x256xf32>,
    %c0_18 = arith.constant 0 : index
    %c127 = arith.constant 127 : index
    %40 = vector.load %arg7[%c0_18, %c127] : memref<16x512xf32, #tpu.memory_space<vmem>>, vector<16x256xf32>
    %cst_19 = arith.constant 0.000000e+00 : f32
    %41 = vector.shape_cast %23 : vector<1x256xi1> to vector<1x256xi1>
    %42 = vector.broadcast %41 : vector<1x256xi1> to vector<16x256xi1>
    %43 = vector.broadcast %cst_19 : f32 to vector<16x256xf32>
    %44 = arith.select %42, %40, %43 : vector<16x256xi1>, vector<16x256xf32>
    %c48 = arith.constant 48 : index
    %c0_20 = arith.constant 0 : index
    %45 = vector.load %arg8[%c48, %c0_20] : memref<144x256xf32, #tpu.memory_space<vmem>>, vector<16x256xf32>
    tpu.vector_store %arg8[%c48, %c0_20], %44 {strides = array<i32>} : memref<144x256xf32, #tpu.memory_space<vmem>>, vector<16x256xf32>,
    %c0_21 = arith.constant 0 : index
    %c128_22 = arith.constant 128 : index
    %46 = vector.load %arg7[%c0_21, %c128_22] : memref<16x512xf32, #tpu.memory_space<vmem>>, vector<16x256xf32>
    %c64 = arith.constant 64 : index
    %c0_23 = arith.constant 0 : index
    %47 = vector.load %arg8[%c64, %c0_23] : memref<144x256xf32, #tpu.memory_space<vmem>>, vector<16x256xf32>
    tpu.vector_store %arg8[%c64, %c0_23], %46 {strides = array<i32>} : memref<144x256xf32, #tpu.memory_space<vmem>>, vector<16x256xf32>,
    %c0_24 = arith.constant 0 : index
    %c129 = arith.constant 129 : index
    %48 = vector.load %arg7[%c0_24, %c129] : memref<16x512xf32, #tpu.memory_space<vmem>>, vector<16x256xf32>
    %cst_25 = arith.constant 0.000000e+00 : f32
    %49 = vector.shape_cast %25 : vector<1x256xi1> to vector<1x256xi1>
    %50 = vector.broadcast %49 : vector<1x256xi1> to vector<16x256xi1>
    %51 = vector.broadcast %cst_25 : f32 to vector<16x256xf32>
    %52 = arith.select %50, %48, %51 : vector<16x256xi1>, vector<16x256xf32>
    %c80 = arith.constant 80 : index
    %c0_26 = arith.constant 0 : index
    %53 = vector.load %arg8[%c80, %c0_26] : memref<144x256xf32, #tpu.memory_space<vmem>>, vector<16x256xf32>
    tpu.vector_store %arg8[%c80, %c0_26], %52 {strides = array<i32>} : memref<144x256xf32, #tpu.memory_space<vmem>>, vector<16x256xf32>,
    %c0_27 = arith.constant 0 : index
    %c143 = arith.constant 143 : index
    %54 = vector.load %arg7[%c0_27, %c143] : memref<16x512xf32, #tpu.memory_space<vmem>>, vector<16x256xf32>
    %cst_28 = arith.constant 0.000000e+00 : f32
    %55 = vector.shape_cast %23 : vector<1x256xi1> to vector<1x256xi1>
    %56 = vector.broadcast %55 : vector<1x256xi1> to vector<16x256xi1>
    %57 = vector.broadcast %cst_28 : f32 to vector<16x256xf32>
    %58 = arith.select %56, %54, %57 : vector<16x256xi1>, vector<16x256xf32>
    %c96 = arith.constant 96 : index
    %c0_29 = arith.constant 0 : index
    %59 = vector.load %arg8[%c96, %c0_29] : memref<144x256xf32, #tpu.memory_space<vmem>>, vector<16x256xf32>
    tpu.vector_store %arg8[%c96, %c0_29], %58 {strides = array<i32>} : memref<144x256xf32, #tpu.memory_space<vmem>>, vector<16x256xf32>,
    %c0_30 = arith.constant 0 : index
    %c144 = arith.constant 144 : index
    %60 = vector.load %arg7[%c0_30, %c144] : memref<16x512xf32, #tpu.memory_space<vmem>>, vector<16x256xf32>
    %c112_31 = arith.constant 112 : index
    %c0_32 = arith.constant 0 : index
    %61 = vector.load %arg8[%c112_31, %c0_32] : memref<144x256xf32, #tpu.memory_space<vmem>>, vector<16x256xf32>
    tpu.vector_store %arg8[%c112_31, %c0_32], %60 {strides = array<i32>} : memref<144x256xf32, #tpu.memory_space<vmem>>, vector<16x256xf32>,
    %c0_33 = arith.constant 0 : index
    %c145 = arith.constant 145 : index
    %62 = vector.load %arg7[%c0_33, %c145] : memref<16x512xf32, #tpu.memory_space<vmem>>, vector<16x256xf32>
    %cst_34 = arith.constant 0.000000e+00 : f32
    %63 = vector.shape_cast %25 : vector<1x256xi1> to vector<1x256xi1>
    %64 = vector.broadcast %63 : vector<1x256xi1> to vector<16x256xi1>
    %65 = vector.broadcast %cst_34 : f32 to vector<16x256xf32>
    %66 = arith.select %64, %62, %65 : vector<16x256xi1>, vector<16x256xf32>
    %c128_35 = arith.constant 128 : index
    %c0_36 = arith.constant 0 : index
    %67 = vector.load %arg8[%c128_35, %c0_36] : memref<144x256xf32, #tpu.memory_space<vmem>>, vector<16x256xf32>
    tpu.vector_store %arg8[%c128_35, %c0_36], %66 {strides = array<i32>} : memref<144x256xf32, #tpu.memory_space<vmem>>, vector<16x256xf32>,
    %c0_37 = arith.constant 0 : index
    %c0_38 = arith.constant 0 : index
    %c0_39 = arith.constant 0 : index
    %68 = vector.load %arg2[%c0_37, %c0_38, %c0_39] : memref<3x4x144xf32, #tpu.memory_space<vmem>>, vector<1x4x144xf32>
    %69 = vector.shape_cast %68 : vector<1x4x144xf32> to vector<4x144xf32>
    %c0_40 = arith.constant 0 : index
    %c0_41 = arith.constant 0 : index
    %70 = vector.load %arg8[%c0_40, %c0_41] : memref<144x256xf32, #tpu.memory_space<vmem>>, vector<144x256xf32>
    %cst_42 = arith.constant dense<0.000000e+00> : vector<4x256xf32>
    %71 = tpu.matmul %69, %70, %cst_42 {dimension_numbers = #tpu.dot_dimension_numbers<[1], [0], [0], [1], [0, 0, 1, 1], [], []>} : vector<4x144xf32>, vector<144x256xf32>, vector<4x256xf32> -> vector<4x256xf32>
    %c0_43 = arith.constant 0 : index
    %c0_44 = arith.constant 0 : index
    %c0_45 = arith.constant 0 : index
    %72 = vector.load %arg3[%c0_43, %c0_44, %c0_45] : memref<3x4x1xf32, #tpu.memory_space<vmem>>, vector<1x4x1xf32>
    %73 = vector.shape_cast %72 : vector<1x4x1xf32> to vector<4x1xf32>
    %74 = vector.broadcast %73 : vector<4x1xf32> to vector<4x256xf32>
    %75 = arith.addf %71, %74 : vector<4x256xf32>
    %cst_46 = arith.constant 0.000000e+00 : f32
    %76 = vector.broadcast %cst_46 : f32 to vector<4x256xf32>
    %77 = arith.maximumf %75, %76 : vector<4x256xf32>
    %c4 = arith.constant 4 : index
    %c128_47 = arith.constant 128 : index
    %78 = vector.load %arg7[%c4, %c128_47] : memref<16x512xf32, #tpu.memory_space<vmem>>, vector<4x256xf32>
    tpu.vector_store %arg7[%c4, %c128_47], %77 {strides = array<i32>} : memref<16x512xf32, #tpu.memory_space<vmem>>, vector<4x256xf32>,
    %c0_48 = arith.constant 0 : index
    %c111_49 = arith.constant 111 : index
    %79 = vector.load %arg7[%c0_48, %c111_49] : memref<16x512xf32, #tpu.memory_space<vmem>>, vector<16x256xf32>
    %cst_50 = arith.constant 0.000000e+00 : f32
    %80 = vector.shape_cast %23 : vector<1x256xi1> to vector<1x256xi1>
    %81 = vector.broadcast %80 : vector<1x256xi1> to vector<16x256xi1>
    %82 = vector.broadcast %cst_50 : f32 to vector<16x256xf32>
    %83 = arith.select %81, %79, %82 : vector<16x256xi1>, vector<16x256xf32>
    %c0_51 = arith.constant 0 : index
    %c0_52 = arith.constant 0 : index
    %84 = vector.load %arg8[%c0_51, %c0_52] : memref<144x256xf32, #tpu.memory_space<vmem>>, vector<16x256xf32>
    tpu.vector_store %arg8[%c0_51, %c0_52], %83 {strides = array<i32>} : memref<144x256xf32, #tpu.memory_space<vmem>>, vector<16x256xf32>,
    %c0_53 = arith.constant 0 : index
    %c112_54 = arith.constant 112 : index
    %85 = vector.load %arg7[%c0_53, %c112_54] : memref<16x512xf32, #tpu.memory_space<vmem>>, vector<16x256xf32>
    %c16_55 = arith.constant 16 : index
    %c0_56 = arith.constant 0 : index
    %86 = vector.load %arg8[%c16_55, %c0_56] : memref<144x256xf32, #tpu.memory_space<vmem>>, vector<16x256xf32>
    tpu.vector_store %arg8[%c16_55, %c0_56], %85 {strides = array<i32>} : memref<144x256xf32, #tpu.memory_space<vmem>>, vector<16x256xf32>,
    %c0_57 = arith.constant 0 : index
    %c113_58 = arith.constant 113 : index
    %87 = vector.load %arg7[%c0_57, %c113_58] : memref<16x512xf32, #tpu.memory_space<vmem>>, vector<16x256xf32>
    %cst_59 = arith.constant 0.000000e+00 : f32
    %88 = vector.shape_cast %25 : vector<1x256xi1> to vector<1x256xi1>
    %89 = vector.broadcast %88 : vector<1x256xi1> to vector<16x256xi1>
    %90 = vector.broadcast %cst_59 : f32 to vector<16x256xf32>
    %91 = arith.select %89, %87, %90 : vector<16x256xi1>, vector<16x256xf32>
    %c32_60 = arith.constant 32 : index
    %c0_61 = arith.constant 0 : index
    %92 = vector.load %arg8[%c32_60, %c0_61] : memref<144x256xf32, #tpu.memory_space<vmem>>, vector<16x256xf32>
    tpu.vector_store %arg8[%c32_60, %c0_61], %91 {strides = array<i32>} : memref<144x256xf32, #tpu.memory_space<vmem>>, vector<16x256xf32>,
    %c0_62 = arith.constant 0 : index
    %c127_63 = arith.constant 127 : index
    %93 = vector.load %arg7[%c0_62, %c127_63] : memref<16x512xf32, #tpu.memory_space<vmem>>, vector<16x256xf32>
    %cst_64 = arith.constant 0.000000e+00 : f32
    %94 = vector.shape_cast %23 : vector<1x256xi1> to vector<1x256xi1>
    %95 = vector.broadcast %94 : vector<1x256xi1> to vector<16x256xi1>
    %96 = vector.broadcast %cst_64 : f32 to vector<16x256xf32>
    %97 = arith.select %95, %93, %96 : vector<16x256xi1>, vector<16x256xf32>
    %c48_65 = arith.constant 48 : index
    %c0_66 = arith.constant 0 : index
    %98 = vector.load %arg8[%c48_65, %c0_66] : memref<144x256xf32, #tpu.memory_space<vmem>>, vector<16x256xf32>
    tpu.vector_store %arg8[%c48_65, %c0_66], %97 {strides = array<i32>} : memref<144x256xf32, #tpu.memory_space<vmem>>, vector<16x256xf32>,
    %c0_67 = arith.constant 0 : index
    %c128_68 = arith.constant 128 : index
    %99 = vector.load %arg7[%c0_67, %c128_68] : memref<16x512xf32, #tpu.memory_space<vmem>>, vector<16x256xf32>
    %c64_69 = arith.constant 64 : index
    %c0_70 = arith.constant 0 : index
    %100 = vector.load %arg8[%c64_69, %c0_70] : memref<144x256xf32, #tpu.memory_space<vmem>>, vector<16x256xf32>
    tpu.vector_store %arg8[%c64_69, %c0_70], %99 {strides = array<i32>} : memref<144x256xf32, #tpu.memory_space<vmem>>, vector<16x256xf32>,
    %c0_71 = arith.constant 0 : index
    %c129_72 = arith.constant 129 : index
    %101 = vector.load %arg7[%c0_71, %c129_72] : memref<16x512xf32, #tpu.memory_space<vmem>>, vector<16x256xf32>
    %cst_73 = arith.constant 0.000000e+00 : f32
    %102 = vector.shape_cast %25 : vector<1x256xi1> to vector<1x256xi1>
    %103 = vector.broadcast %102 : vector<1x256xi1> to vector<16x256xi1>
    %104 = vector.broadcast %cst_73 : f32 to vector<16x256xf32>
    %105 = arith.select %103, %101, %104 : vector<16x256xi1>, vector<16x256xf32>
    %c80_74 = arith.constant 80 : index
    %c0_75 = arith.constant 0 : index
    %106 = vector.load %arg8[%c80_74, %c0_75] : memref<144x256xf32, #tpu.memory_space<vmem>>, vector<16x256xf32>
    tpu.vector_store %arg8[%c80_74, %c0_75], %105 {strides = array<i32>} : memref<144x256xf32, #tpu.memory_space<vmem>>, vector<16x256xf32>,
    %c0_76 = arith.constant 0 : index
    %c143_77 = arith.constant 143 : index
    %107 = vector.load %arg7[%c0_76, %c143_77] : memref<16x512xf32, #tpu.memory_space<vmem>>, vector<16x256xf32>
    %cst_78 = arith.constant 0.000000e+00 : f32
    %108 = vector.shape_cast %23 : vector<1x256xi1> to vector<1x256xi1>
    %109 = vector.broadcast %108 : vector<1x256xi1> to vector<16x256xi1>
    %110 = vector.broadcast %cst_78 : f32 to vector<16x256xf32>
    %111 = arith.select %109, %107, %110 : vector<16x256xi1>, vector<16x256xf32>
    %c96_79 = arith.constant 96 : index
    %c0_80 = arith.constant 0 : index
    %112 = vector.load %arg8[%c96_79, %c0_80] : memref<144x256xf32, #tpu.memory_space<vmem>>, vector<16x256xf32>
    tpu.vector_store %arg8[%c96_79, %c0_80], %111 {strides = array<i32>} : memref<144x256xf32, #tpu.memory_space<vmem>>, vector<16x256xf32>,
    %c0_81 = arith.constant 0 : index
    %c144_82 = arith.constant 144 : index
    %113 = vector.load %arg7[%c0_81, %c144_82] : memref<16x512xf32, #tpu.memory_space<vmem>>, vector<16x256xf32>
    %c112_83 = arith.constant 112 : index
    %c0_84 = arith.constant 0 : index
    %114 = vector.load %arg8[%c112_83, %c0_84] : memref<144x256xf32, #tpu.memory_space<vmem>>, vector<16x256xf32>
    tpu.vector_store %arg8[%c112_83, %c0_84], %113 {strides = array<i32>} : memref<144x256xf32, #tpu.memory_space<vmem>>, vector<16x256xf32>,
    %c0_85 = arith.constant 0 : index
    %c145_86 = arith.constant 145 : index
    %115 = vector.load %arg7[%c0_85, %c145_86] : memref<16x512xf32, #tpu.memory_space<vmem>>, vector<16x256xf32>
    %cst_87 = arith.constant 0.000000e+00 : f32
    %116 = vector.shape_cast %25 : vector<1x256xi1> to vector<1x256xi1>
    %117 = vector.broadcast %116 : vector<1x256xi1> to vector<16x256xi1>
    %118 = vector.broadcast %cst_87 : f32 to vector<16x256xf32>
    %119 = arith.select %117, %115, %118 : vector<16x256xi1>, vector<16x256xf32>
    %c128_88 = arith.constant 128 : index
    %c0_89 = arith.constant 0 : index
    %120 = vector.load %arg8[%c128_88, %c0_89] : memref<144x256xf32, #tpu.memory_space<vmem>>, vector<16x256xf32>
    tpu.vector_store %arg8[%c128_88, %c0_89], %119 {strides = array<i32>} : memref<144x256xf32, #tpu.memory_space<vmem>>, vector<16x256xf32>,
    %c1 = arith.constant 1 : index
    %c0_90 = arith.constant 0 : index
    %c0_91 = arith.constant 0 : index
    %121 = vector.load %arg2[%c1, %c0_90, %c0_91] : memref<3x4x144xf32, #tpu.memory_space<vmem>>, vector<1x4x144xf32>
    %122 = vector.shape_cast %121 : vector<1x4x144xf32> to vector<4x144xf32>
    %c0_92 = arith.constant 0 : index
    %c0_93 = arith.constant 0 : index
    %123 = vector.load %arg8[%c0_92, %c0_93] : memref<144x256xf32, #tpu.memory_space<vmem>>, vector<144x256xf32>
    %cst_94 = arith.constant dense<0.000000e+00> : vector<4x256xf32>
    %124 = tpu.matmul %122, %123, %cst_94 {dimension_numbers = #tpu.dot_dimension_numbers<[1], [0], [0], [1], [0, 0, 1, 1], [], []>} : vector<4x144xf32>, vector<144x256xf32>, vector<4x256xf32> -> vector<4x256xf32>
    %c1_95 = arith.constant 1 : index
    %c0_96 = arith.constant 0 : index
    %c0_97 = arith.constant 0 : index
    %125 = vector.load %arg3[%c1_95, %c0_96, %c0_97] : memref<3x4x1xf32, #tpu.memory_space<vmem>>, vector<1x4x1xf32>
    %126 = vector.shape_cast %125 : vector<1x4x1xf32> to vector<4x1xf32>
    %127 = vector.broadcast %126 : vector<4x1xf32> to vector<4x256xf32>
    %128 = arith.addf %124, %127 : vector<4x256xf32>
    %cst_98 = arith.constant 0.000000e+00 : f32
    %129 = vector.broadcast %cst_98 : f32 to vector<4x256xf32>
    %130 = arith.maximumf %128, %129 : vector<4x256xf32>
    %c8 = arith.constant 8 : index
    %c128_99 = arith.constant 128 : index
    %131 = vector.load %arg7[%c8, %c128_99] : memref<16x512xf32, #tpu.memory_space<vmem>>, vector<4x256xf32>
    tpu.vector_store %arg7[%c8, %c128_99], %130 {strides = array<i32>} : memref<16x512xf32, #tpu.memory_space<vmem>>, vector<4x256xf32>,
    %c0_100 = arith.constant 0 : index
    %c111_101 = arith.constant 111 : index
    %132 = vector.load %arg7[%c0_100, %c111_101] : memref<16x512xf32, #tpu.memory_space<vmem>>, vector<16x256xf32>
    %cst_102 = arith.constant 0.000000e+00 : f32
    %133 = vector.shape_cast %23 : vector<1x256xi1> to vector<1x256xi1>
    %134 = vector.broadcast %133 : vector<1x256xi1> to vector<16x256xi1>
    %135 = vector.broadcast %cst_102 : f32 to vector<16x256xf32>
    %136 = arith.select %134, %132, %135 : vector<16x256xi1>, vector<16x256xf32>
    %c0_103 = arith.constant 0 : index
    %c0_104 = arith.constant 0 : index
    %137 = vector.load %arg8[%c0_103, %c0_104] : memref<144x256xf32, #tpu.memory_space<vmem>>, vector<16x256xf32>
    tpu.vector_store %arg8[%c0_103, %c0_104], %136 {strides = array<i32>} : memref<144x256xf32, #tpu.memory_space<vmem>>, vector<16x256xf32>,
    %c0_105 = arith.constant 0 : index
    %c112_106 = arith.constant 112 : index
    %138 = vector.load %arg7[%c0_105, %c112_106] : memref<16x512xf32, #tpu.memory_space<vmem>>, vector<16x256xf32>
    %c16_107 = arith.constant 16 : index
    %c0_108 = arith.constant 0 : index
    %139 = vector.load %arg8[%c16_107, %c0_108] : memref<144x256xf32, #tpu.memory_space<vmem>>, vector<16x256xf32>
    tpu.vector_store %arg8[%c16_107, %c0_108], %138 {strides = array<i32>} : memref<144x256xf32, #tpu.memory_space<vmem>>, vector<16x256xf32>,
    %c0_109 = arith.constant 0 : index
    %c113_110 = arith.constant 113 : index
    %140 = vector.load %arg7[%c0_109, %c113_110] : memref<16x512xf32, #tpu.memory_space<vmem>>, vector<16x256xf32>
    %cst_111 = arith.constant 0.000000e+00 : f32
    %141 = vector.shape_cast %25 : vector<1x256xi1> to vector<1x256xi1>
    %142 = vector.broadcast %141 : vector<1x256xi1> to vector<16x256xi1>
    %143 = vector.broadcast %cst_111 : f32 to vector<16x256xf32>
    %144 = arith.select %142, %140, %143 : vector<16x256xi1>, vector<16x256xf32>
    %c32_112 = arith.constant 32 : index
    %c0_113 = arith.constant 0 : index
    %145 = vector.load %arg8[%c32_112, %c0_113] : memref<144x256xf32, #tpu.memory_space<vmem>>, vector<16x256xf32>
    tpu.vector_store %arg8[%c32_112, %c0_113], %144 {strides = array<i32>} : memref<144x256xf32, #tpu.memory_space<vmem>>, vector<16x256xf32>,
    %c0_114 = arith.constant 0 : index
    %c127_115 = arith.constant 127 : index
    %146 = vector.load %arg7[%c0_114, %c127_115] : memref<16x512xf32, #tpu.memory_space<vmem>>, vector<16x256xf32>
    %cst_116 = arith.constant 0.000000e+00 : f32
    %147 = vector.shape_cast %23 : vector<1x256xi1> to vector<1x256xi1>
    %148 = vector.broadcast %147 : vector<1x256xi1> to vector<16x256xi1>
    %149 = vector.broadcast %cst_116 : f32 to vector<16x256xf32>
    %150 = arith.select %148, %146, %149 : vector<16x256xi1>, vector<16x256xf32>
    %c48_117 = arith.constant 48 : index
    %c0_118 = arith.constant 0 : index
    %151 = vector.load %arg8[%c48_117, %c0_118] : memref<144x256xf32, #tpu.memory_space<vmem>>, vector<16x256xf32>
    tpu.vector_store %arg8[%c48_117, %c0_118], %150 {strides = array<i32>} : memref<144x256xf32, #tpu.memory_space<vmem>>, vector<16x256xf32>,
    %c0_119 = arith.constant 0 : index
    %c128_120 = arith.constant 128 : index
    %152 = vector.load %arg7[%c0_119, %c128_120] : memref<16x512xf32, #tpu.memory_space<vmem>>, vector<16x256xf32>
    %c64_121 = arith.constant 64 : index
    %c0_122 = arith.constant 0 : index
    %153 = vector.load %arg8[%c64_121, %c0_122] : memref<144x256xf32, #tpu.memory_space<vmem>>, vector<16x256xf32>
    tpu.vector_store %arg8[%c64_121, %c0_122], %152 {strides = array<i32>} : memref<144x256xf32, #tpu.memory_space<vmem>>, vector<16x256xf32>,
    %c0_123 = arith.constant 0 : index
    %c129_124 = arith.constant 129 : index
    %154 = vector.load %arg7[%c0_123, %c129_124] : memref<16x512xf32, #tpu.memory_space<vmem>>, vector<16x256xf32>
    %cst_125 = arith.constant 0.000000e+00 : f32
    %155 = vector.shape_cast %25 : vector<1x256xi1> to vector<1x256xi1>
    %156 = vector.broadcast %155 : vector<1x256xi1> to vector<16x256xi1>
    %157 = vector.broadcast %cst_125 : f32 to vector<16x256xf32>
    %158 = arith.select %156, %154, %157 : vector<16x256xi1>, vector<16x256xf32>
    %c80_126 = arith.constant 80 : index
    %c0_127 = arith.constant 0 : index
    %159 = vector.load %arg8[%c80_126, %c0_127] : memref<144x256xf32, #tpu.memory_space<vmem>>, vector<16x256xf32>
    tpu.vector_store %arg8[%c80_126, %c0_127], %158 {strides = array<i32>} : memref<144x256xf32, #tpu.memory_space<vmem>>, vector<16x256xf32>,
    %c0_128 = arith.constant 0 : index
    %c143_129 = arith.constant 143 : index
    %160 = vector.load %arg7[%c0_128, %c143_129] : memref<16x512xf32, #tpu.memory_space<vmem>>, vector<16x256xf32>
    %cst_130 = arith.constant 0.000000e+00 : f32
    %161 = vector.shape_cast %23 : vector<1x256xi1> to vector<1x256xi1>
    %162 = vector.broadcast %161 : vector<1x256xi1> to vector<16x256xi1>
    %163 = vector.broadcast %cst_130 : f32 to vector<16x256xf32>
    %164 = arith.select %162, %160, %163 : vector<16x256xi1>, vector<16x256xf32>
    %c96_131 = arith.constant 96 : index
    %c0_132 = arith.constant 0 : index
    %165 = vector.load %arg8[%c96_131, %c0_132] : memref<144x256xf32, #tpu.memory_space<vmem>>, vector<16x256xf32>
    tpu.vector_store %arg8[%c96_131, %c0_132], %164 {strides = array<i32>} : memref<144x256xf32, #tpu.memory_space<vmem>>, vector<16x256xf32>,
    %c0_133 = arith.constant 0 : index
    %c144_134 = arith.constant 144 : index
    %166 = vector.load %arg7[%c0_133, %c144_134] : memref<16x512xf32, #tpu.memory_space<vmem>>, vector<16x256xf32>
    %c112_135 = arith.constant 112 : index
    %c0_136 = arith.constant 0 : index
    %167 = vector.load %arg8[%c112_135, %c0_136] : memref<144x256xf32, #tpu.memory_space<vmem>>, vector<16x256xf32>
    tpu.vector_store %arg8[%c112_135, %c0_136], %166 {strides = array<i32>} : memref<144x256xf32, #tpu.memory_space<vmem>>, vector<16x256xf32>,
    %c0_137 = arith.constant 0 : index
    %c145_138 = arith.constant 145 : index
    %168 = vector.load %arg7[%c0_137, %c145_138] : memref<16x512xf32, #tpu.memory_space<vmem>>, vector<16x256xf32>
    %cst_139 = arith.constant 0.000000e+00 : f32
    %169 = vector.shape_cast %25 : vector<1x256xi1> to vector<1x256xi1>
    %170 = vector.broadcast %169 : vector<1x256xi1> to vector<16x256xi1>
    %171 = vector.broadcast %cst_139 : f32 to vector<16x256xf32>
    %172 = arith.select %170, %168, %171 : vector<16x256xi1>, vector<16x256xf32>
    %c128_140 = arith.constant 128 : index
    %c0_141 = arith.constant 0 : index
    %173 = vector.load %arg8[%c128_140, %c0_141] : memref<144x256xf32, #tpu.memory_space<vmem>>, vector<16x256xf32>
    tpu.vector_store %arg8[%c128_140, %c0_141], %172 {strides = array<i32>} : memref<144x256xf32, #tpu.memory_space<vmem>>, vector<16x256xf32>,
    %c2 = arith.constant 2 : index
    %c0_142 = arith.constant 0 : index
    %c0_143 = arith.constant 0 : index
    %174 = vector.load %arg2[%c2, %c0_142, %c0_143] : memref<3x4x144xf32, #tpu.memory_space<vmem>>, vector<1x4x144xf32>
    %175 = vector.shape_cast %174 : vector<1x4x144xf32> to vector<4x144xf32>
    %c0_144 = arith.constant 0 : index
    %c0_145 = arith.constant 0 : index
    %176 = vector.load %arg8[%c0_144, %c0_145] : memref<144x256xf32, #tpu.memory_space<vmem>>, vector<144x256xf32>
    %cst_146 = arith.constant dense<0.000000e+00> : vector<4x256xf32>
    %177 = tpu.matmul %175, %176, %cst_146 {dimension_numbers = #tpu.dot_dimension_numbers<[1], [0], [0], [1], [0, 0, 1, 1], [], []>} : vector<4x144xf32>, vector<144x256xf32>, vector<4x256xf32> -> vector<4x256xf32>
    %c2_147 = arith.constant 2 : index
    %c0_148 = arith.constant 0 : index
    %c0_149 = arith.constant 0 : index
    %178 = vector.load %arg3[%c2_147, %c0_148, %c0_149] : memref<3x4x1xf32, #tpu.memory_space<vmem>>, vector<1x4x1xf32>
    %179 = vector.shape_cast %178 : vector<1x4x1xf32> to vector<4x1xf32>
    %180 = vector.broadcast %179 : vector<4x1xf32> to vector<4x256xf32>
    %181 = arith.addf %177, %180 : vector<4x256xf32>
    %cst_150 = arith.constant 0.000000e+00 : f32
    %182 = vector.broadcast %cst_150 : f32 to vector<4x256xf32>
    %183 = arith.maximumf %181, %182 : vector<4x256xf32>
    %c12 = arith.constant 12 : index
    %c128_151 = arith.constant 128 : index
    %184 = vector.load %arg7[%c12, %c128_151] : memref<16x512xf32, #tpu.memory_space<vmem>>, vector<4x256xf32>
    tpu.vector_store %arg7[%c12, %c128_151], %183 {strides = array<i32>} : memref<16x512xf32, #tpu.memory_space<vmem>>, vector<4x256xf32>,
    %c0_152 = arith.constant 0 : index
    %c128_153 = arith.constant 128 : index
    %185 = vector.load %arg7[%c0_152, %c128_153] : memref<16x512xf32, #tpu.memory_space<vmem>>, vector<16x256xf32>
    %c0_154 = arith.constant 0 : index
    %c0_155 = arith.constant 0 : index
    %186 = vector.load %arg4[%c0_154, %c0_155] : memref<4x16xf32, #tpu.memory_space<vmem>>, vector<4x16xf32>
    %cst_156 = arith.constant dense<0.000000e+00> : vector<4x256xf32>
    %187 = tpu.matmul %186, %185, %cst_156 {dimension_numbers = #tpu.dot_dimension_numbers<[1], [0], [0], [1], [0, 0, 1, 1], [], []>} : vector<4x16xf32>, vector<16x256xf32>, vector<4x256xf32> -> vector<4x256xf32>
    %c0_157 = arith.constant 0 : index
    %c0_158 = arith.constant 0 : index
    %188 = vector.load %arg5[%c0_157, %c0_158] : memref<4x1xf32, #tpu.memory_space<vmem>>, vector<4x1xf32>
    %189 = vector.broadcast %188 : vector<4x1xf32> to vector<4x256xf32>
    %190 = arith.addf %187, %189 : vector<4x256xf32>
    %c0_159 = arith.constant 0 : index
    %c0_160 = arith.constant 0 : index
    %c0_161 = arith.constant 0 : index
    %191 = vector.load %arg1[%c0_159, %c0_160, %c0_161] : memref<1x4x256xf32, #tpu.memory_space<vmem>>, vector<1x4x256xf32>
    %192 = vector.shape_cast %191 : vector<1x4x256xf32> to vector<4x256xf32>
    %193 = arith.addf %190, %192 : vector<4x256xf32>
    %c0_162 = arith.constant 0 : index
    %c0_163 = arith.constant 0 : index
    %c0_164 = arith.constant 0 : index
    %194 = vector.load %arg6[%c0_162, %c0_163, %c0_164] : memref<1x4x256xf32, #tpu.memory_space<vmem>>, vector<1x4x256xf32>
    %195 = vector.shape_cast %194 : vector<1x4x256xf32> to vector<4x256xf32>
    %196 = vector.shape_cast %193 : vector<4x256xf32> to vector<1x4x256xf32>
    tpu.vector_store %arg6[%c0_162, %c0_163, %c0_164], %196 {strides = array<i32>} : memref<1x4x256xf32, #tpu.memory_space<vmem>>, vector<1x4x256xf32>,
    return
  }
  func.func @transform_0(%arg0: i32) -> (i32, i32, i32) {
    %c0_i32 = arith.constant 0 : i32
    %c0_i32_0 = arith.constant 0 : i32
    %c0_i32_1 = arith.constant 0 : i32
    return %arg0, %c0_i32, %c0_i32_0 : i32, i32, i32
  }
  func.func @transform_1(%arg0: i32) -> (i32, i32, i32) {
    %c0_i32 = arith.constant 0 : i32
    %c0_i32_0 = arith.constant 0 : i32
    %c0_i32_1 = arith.constant 0 : i32
    %c0_i32_2 = arith.constant 0 : i32
    return %c0_i32, %c0_i32_0, %c0_i32_1 : i32, i32, i32
  }
  func.func @transform_2(%arg0: i32) -> (i32, i32, i32) {
    %c0_i32 = arith.constant 0 : i32
    %c0_i32_0 = arith.constant 0 : i32
    %c0_i32_1 = arith.constant 0 : i32
    %c0_i32_2 = arith.constant 0 : i32
    return %c0_i32, %c0_i32_0, %c0_i32_1 : i32, i32, i32
  }
  func.func @transform_3(%arg0: i32) -> (i32, i32) {
    %c0_i32 = arith.constant 0 : i32
    %c0_i32_0 = arith.constant 0 : i32
    %c0_i32_1 = arith.constant 0 : i32
    return %c0_i32, %c0_i32_0 : i32, i32
  }
  func.func @transform_4(%arg0: i32) -> (i32, i32) {
    %c0_i32 = arith.constant 0 : i32
    %c0_i32_0 = arith.constant 0 : i32
    %c0_i32_1 = arith.constant 0 : i32
    return %c0_i32, %c0_i32_0 : i32, i32
  }
  func.func @transform_5(%arg0: i32) -> (i32, i32, i32) {
    %c0_i32 = arith.constant 0 : i32
    %c0_i32_0 = arith.constant 0 : i32
    %c0_i32_1 = arith.constant 0 : i32
    return %arg0, %c0_i32, %c0_i32_0 : i32, i32, i32
  }
}

</mosaic_0001>

<bundles_post_ra>
// kernel: rdb_forward.1
= control target key start
LH: loop header
LB: loop body
LE: loop exit
PB: predicated region body
PF: predicated region fallthrough
CT: control target
= control target key end

     0   :  { %s2193_s18 = smov 0   ;;  %s2942_s0 = inlined_call_operand.vmem [shape: f32[2,4,256], index: 0, kind: input, shape index: {}]   ;;  %s2943_s1 = inlined_call_operand.vmem [shape: f32[3,4,144], index: 1, kind: input, shape index: {}]   ;;  %s2944_s2 = inlined_call_operand.vmem [shape: f32[3,4,1], index: 2, kind: input, shape index: {}]   ;;  %s2945_s3 = inlined_call_operand.vmem [shape: f32[4,16], index: 3, kind: input, shape index: {}]   ;;  %s2946_s4 = inlined_call_operand.vmem [shape: f32[4,1], index: 4, kind: input, shape index: {}]   ;;  %s2947_s5 = inlined_call_operand.vmem [shape: f32[2,4,256], index: 5, kind: output, shape index: {}]  }
   0x1 LB: > { %s1792_s19 = sadd.s32 4294967295, %s2151_s18   ;;  %p1796_p0 = scmp.ge.s32.totalorder %s2151_s18, 1  ;;  %s2151_s18 = sphi %s2193_s18, %s15_s18  }
   0x2   : > { %p187_p1 = scmp.lt.s32.totalorder %s2151_s18, 3 }
   0x4   : > { %p188_p2 = pnand %p1796_p0, %p187_p1 }
   0x5   : > { %p215_p3 = scmp.lt.s32.totalorder (!%p188_p2), %s1792_s19, 1  ;;  %s2154_s20 = smov (!%p188_p2), 113  }
   0x6   : > { %191 = sbr.rel (%p188_p2) target bundleno = 1146 (0x47a), region = 40  ;;  %s2155_s21 = smov (!%p188_p2), 112  }
   0x7   : > { %s2156_s26 = smov (!%p188_p2), 127   ;;  %s2157_s27 = smov (!%p188_p2), 1  }
   0x8   : > { %s2158_s28 = smov (!%p188_p2), 15   ;;  %s2159_s29 = smov (!%p188_p2), 16  }
   0x9   : > { %s2160_s30 = smov (!%p188_p2), 17   ;;  %s2161_s6 = smov (!%p188_p2), 111  }
   0xb   : > { %v2153_v0 = vmov 0.0   ;;  %s2957_s19 = smov (!%p215_p3, %s1792_s19), 1  ;;  %vm555_vm0 = vcmask 916480   ;;  %v242_v20 = vlaneseq  ;;  %vm514_vm1 = vcmask 924672   ;;  %v1671_v40 = vld [vmem:[%s2945_s3] sm:$0xf] }
   0xc   : > { %231 = vst [vmem:[#allocation2 + $0x28] sm:$0xff] %v2153_v0  ;;  %1913 = vrot.lane.b32.xlu1 %v2153_v0, %s2154_s20  ;;  %1918 = vrot.lane.b32.xlu2 %v2153_v0, %s2154_s20  ;;  %s1815_s22 = sshll.u32 %s2957_s19, 3  ;;  %vm473_vm5 = vcmask 1039360   ;;  %vm424_vm6 = vcmask 7168   ;;  %vm383_vm8 = vcmask 121856   ;;  %vm342_vm9 = vcmask 130048  }
   0xd   : > { %226 = vst [vmem:[#allocation2] sm:$0xff] %v2153_v0  ;;  %1908 = vrot.lane.b32.xlu0 %v2153_v0, %s2155_s21  ;;  %s2218_s25 = scalar_lea.vmem %s2942_s0, %s1815_s22  ;;  %v243_v23 = vand.u32 127, %v242_v20  ;;  %vm592_vm10 = vcmask 908288   ;;  %vm301_vm11 = vcmask 138240   ;;  %vm1733_vm12 = vcmask 1043456  }
   0xe   : > { %227 = vst [vmem:[#allocation2 + $0x18] sm:$0xff] %v2153_v0  ;;  %v233_v1 = vld [vmem:[%s2218_s25] sm:$0xff] }
   0xf   : > { %230 = vst [vmem:[#allocation2 + $0x20] sm:$0xff] %v2153_v0  ;;  %v244_v24 = vadd.s32 128, %v243_v23  ;;  %v249_v27 = vand.u32 15, %v243_v23 }
  0x10   : > { %235 = vst [vmem:[#allocation1] ss:$2 sm:$0xff] %v233_v1 }
  0x11   : > { %v256_v28 = vand.u32 15, %v244_v24  ;;  %vm2308_vm2 = vcmp.gt.s32.totalorder %v249_v27, 0  ;;  %vm2361_vm7 = vcmp.lt.s32.totalorder %v249_v27, 15  ;;  %v1803_v24 = vld [vmem:[%s2943_s1 + $0x8] sm:$0xff] }
  0x13   : > { %vm2312_vm3 = vcmp.gt.s32.totalorder %v256_v28, 0  ;;  %vm2325_vm4 = vcmp.lt.s32.totalorder %v256_v28, 15 }
  0x14   : > { %1923 = vrot.lane.b32.xlu2 %v2153_v0, %s2156_s26  ;;  %1928 = vrot.lane.b32.xlu1 %v2153_v0, %s2156_s26 }
  0x17   : > { %v237_v2 = vld.sshfl [vmem:[#allocation1 + $0x8] sm:$0xff pattern:$0x75316420]  ;;  %v236_v3 = vld.sshfl [vmem:[#allocation1] sm:$0xff pattern:$0x75316420] }
  0x18   : > { %241 = vst [vmem:[#allocation2 + $0x18] sm:$0xf] %v237_v2 }
  0x19   : > { %240 = vst [vmem:[#allocation2] sm:$0xf] %v236_v3 }
  0x1c   : > { %1933 = vrot.lane.b32.xlu2 %v2153_v0, %s2157_s27 }
  0x1f   : > { %v2228_v4 = vld [vmem:[#allocation2 + $0x18] sm:$0xff] }
  0x20   : > { %v1937_v5 = vpack.i.bf16 0.0, %v2228_v4  ;;  %504 = vrot.lane.b32.xlu1 %v2228_v4, %s2154_s20  ;;  %v2233_v6 = vld [vmem:[#allocation2] sm:$0xff] }
  0x21   : > { %v1942_v7 = vpack.i.bf16 %v2233_v6, %v2153_v0  ;;  %v1957_v8 = vpack.i.bf16 %v2228_v4, %v2233_v6 }
  0x22   : > { %1938 = vrot.lane.b32.xlu0 %v1937_v5, %s2155_s21 }
  0x24   : > { %1943 = vrot.lane.b32.xlu2 %v1942_v7, %s2155_s21  ;;  %v609_v7 = vld [vmem:[%s2943_s1] sm:$0xff] }
  0x25   : > { %653 = vst [vmem:[#allocation1] ss:$2 sm:$0xff] %v609_v7 }
  0x28   : > { %416 = vrot.lane.b32.xlu1 %v2228_v4, %s2157_s27 }
  0x2a   : > { %463 = vrot.lane.b32.xlu0 %v2228_v4, %s2156_s26 }
  0x2c   : > { %375 = vrot.lane.b32.xlu2 %v2228_v4, %s2158_s28  ;;  %v2402_v20 = vld.sshfl [vmem:[#allocation1] sm:$0xff pattern:$0x75316420]  ;;  %v2404_v23 = vld.sshfl [vmem:[#allocation1 + $0x8] sm:$0xff pattern:$0x75316420] }
  0x2d   : > { %1115 = vst [vmem:[#allocation1] ss:$2 sm:$0xff] %v1803_v24 }
  0x30   : > { %373 = vrot.lane.b32.xlu1 %v2233_v6, %s2158_s28 }
  0x32   : > { %414 = vrot.lane.b32.xlu0 %v2233_v6, %s2157_s27 }
  0x34   : > { %1958 = vrot.lane.b32.xlu2 %v1957_v8, %s2159_s29 }
  0x38   : > { %502 = vrot.lane.b32.xlu1 %v2233_v6, %s2154_s20 }
  0x3a   : > { %1948 = vrot.lane.b32.xlu0 %v2153_v0, %s2158_s28 }
  0x3c   : > { %291 = vrot.lane.b32.xlu2 %v2233_v6, %s2160_s30 }
  0x40   : > { %461 = vrot.lane.b32.xlu1 %v2233_v6, %s2156_s26 }
  0x42   : > { %1953 = vrot.lane.b32.xlu0 %v2153_v0, %s2159_s29 }
  0x44   : > { %582 = vrot.lane.b32.xlu2 %v2228_v4, %s2161_s6 }
  0x48   : > { %1968 = vrot.lane.b32.xlu1 %v2153_v0, %s2161_s6 }
  0x4a   : > { %1963 = vrot.lane.b32.xlu0 %v2153_v0, %s2160_s30 }
  0x4c   : > { %1978 = vrot.lane.b32.xlu2 %v2153_v0, %s2158_s28 }
  0x50   : > { %1973 = vrot.lane.b32.xlu1 %v2153_v0, %s2157_s27 }
  0x52   : > { %293 = vrot.lane.b32.xlu0 %v2228_v4, %s2160_s30 }
  0x54   : > { %586 = vrot.lane.b32.xlu2 %v2153_v0, %s2161_s6 }
  0x58   : > { %1988 = vrot.lane.b32.xlu1 %v2153_v0, %s2160_s30 }
  0x5a   : > { %584 = vrot.lane.b32.xlu0 %v2153_v0, %s2161_s6 }
  0x5c   : > { %1994 = vrot.lane.b32.xlu2 %v2153_v0, %s2155_s21 }
  0x62   : > { %1983 = vrot.lane.b32.xlu0 %v2153_v0, %s2159_s29 }
  0x64   : > { %2019 = vrot.lane.b32.xlu2 %v2153_v0, %s2157_s27 }
  0x66   : > { %v1919_v9 = vpop.permute.xlu2 %1918 }
  0x67   : > { %v1921_v29 = vunpack.i.h.bf16 %v1919_v9  ;;  %v1920_v36 = vunpack.i.l.bf16 %v1919_v9 }
  0x6a   : > { %580 = vrot.lane.b32.xlu0 %v2233_v6, %s2161_s6 }
  0x6e   : > { %v2288_v10 = vpop.permute.xlu2 %1923 }
  0x6f   : > { %v1926_v41 = vunpack.i.h.bf16 %v2288_v10  ;;  %v1925_v45 = vunpack.i.l.bf16 %v2288_v10 }
  0x71   : > { %v477_v50 = vsel %vm473_vm5, %v1925_v45, %v1926_v41 }
  0x72   : > { %2004 = vrot.lane.b32.xlu0 %v2153_v0, %s2154_s20 }
  0x76   : > { %v2292_v11 = vpop.permute.xlu2 %1933 }
  0x77   : > { %v1936_v53 = vunpack.i.h.bf16 %v2292_v11  ;;  %v1935_v54 = vunpack.i.l.bf16 %v2292_v11 }
  0x79   : > { %v428_v57 = vsel %vm424_vm6, %v1935_v54, %v1936_v53 }
  0x7a   : > { %2014 = vrot.lane.b32.xlu0 %v2153_v0, %s2156_s26 }
  0x7e   : > { %v1944_v12 = vpop.permute.xlu2 %1943  ;;  %v1914_v14 = vpop.permute.xlu1 %1913 }
  0x7f   : > { %v1909_v13 = vpop.permute.xlu0 %1908  ;;  %v1945_v15 = vunpack.i.l.bf16 %v1944_v12  ;;  %v1946_v26 = vunpack.i.h.bf16 %v1944_v12  ;;  %v1916_v32 = vunpack.i.h.bf16 %v1914_v14  ;;  %v1915_v33 = vunpack.i.l.bf16 %v1914_v14 }
  0x80   : > { %v1911_v16 = vunpack.i.h.bf16 %v1909_v13  ;;  %v1910_v17 = vunpack.i.l.bf16 %v1909_v13 }
  0x81   : > { %v517_v42 = vsel %vm514_vm1, %v1921_v29, %v1915_v33  ;;  %v518_v43 = vsel %vm514_vm1, %v1915_v33, %v1916_v32  ;;  %v646_v33 = vld [vmem:[%s2944_s2] sm:$0xf] }
  0x82   : > { %v558_v18 = vsel %vm555_vm0, %v1945_v15, %v1910_v17  ;;  %v559_v19 = vsel %vm555_vm0, %v1910_v17, %v1911_v16  ;;  %2024 = vrot.lane.b32.xlu0 %v2153_v0, %s2158_s28 }
  0x83   : > { %659 = vmatpush.msra.mxu0 %v558_v18  ;;  %699 = vmatpush.msra.mxu2 %v559_v19 }
  0x86   : > { %v2300_v21 = vpop.permute.xlu1 %1928  ;;  %v2302_v22 = vpop.permute.xlu2 %375 }
  0x87   : > { %v1930_v49 = vunpack.i.l.bf16 %v2300_v21  ;;  %v1931_v60 = vunpack.i.h.bf16 %v2300_v21 }
  0x8e   : > { %v2304_v31 = vpop.permute.xlu2 %1958 }
  0x8f   : > { %v1961_v12 = vunpack.i.h.bf16 %v2304_v31  ;;  %v1960_v13 = vunpack.i.l.bf16 %v2304_v31 }
  0x91   : > { %v344_v19 = vsel %vm342_vm9, %v1960_v13, %v1961_v12 }
  0x92   : > { %v505_v25 = vpop.permute.xlu1 %504 }
  0x93   : > { %v516_v46 = vsel %vm514_vm1, %v505_v25, %v1920_v36 }
  0x94   : > { %v1939_v30 = vpop.permute.xlu0 %1938 }
  0x95   : > { %v1941_v34 = vunpack.i.h.bf16 %v1939_v30  ;;  %v1940_v35 = vunpack.i.l.bf16 %v1939_v30 }
  0x96   : > { %v2335_v51 = vpop.permute.xlu2 %291 }
  0x97   : > { %v556_v37 = vsel %vm555_vm0, %v1946_v26, %v1940_v35  ;;  %v557_v38 = vsel %vm555_vm0, %v1940_v35, %v1941_v34  ;;  %v2162_v34 = vmov 0  }
  0x98   : > { %660 = vmatpush.msra.mxu0 %v556_v37  ;;  %700 = vmatpush.msra.mxu2 %v557_v38 }
  0x99   : > { %1992 = vset.pattern.permute.xlu1 %v2162_v34  ;;  %2083 = vset.pattern.permute.xlu2 %v2162_v34 }
  0x9a   : > { %1817 = vmatpush.msk.msra.mxu0 %vm2308_vm2, %v517_v42  ;;  %1829 = vmatpush.msk.msra.mxu2 %vm2312_vm3, %v518_v43  ;;  %v417_v44 = vpop.permute.xlu1 %416 }
  0x9b   : > { %649 = vperm.xlu1 %1992, %v646_v33   ;;  %2144 = vset.pattern.permute.xlu0 %v2162_v34 }
  0x9c   : > { %1830 = vmatpush.msk.msra.mxu2 %vm2312_vm3, %v516_v46  ;;  %v464_v48 = vpop.permute.xlu0 %463 }
  0x9d   : > { %v475_v52 = vsel %vm473_vm5, %v464_v48, %v1930_v49 }
  0x9e   : > { %1831 = vmatpush.msk.msra.mxu2 %vm2325_vm4, %v477_v50  ;;  %v2355_v59 = vpop.permute.xlu2 %582 }
  0xa0   : > { %1832 = vmatpush.msk.msra.mxu2 %vm2325_vm4, %v475_v52 }
  0xa2   : > { %705 = vmatpush.msra.mxu2 %v2153_v0  ;;  %v2343_v55 = vpop.permute.xlu1 %373 }
  0xa3   : > { %v385_v8 = vsel %vm383_vm8, %v2343_v55, %v2302_v22  ;;  %1999 = vrot.lane.b32.xlu1 %v2153_v0, %s2154_s20 }
  0xa4   : > { %706 = vmatpush.msra.mxu2 %v2228_v4  ;;  %v2346_v56 = vpop.permute.xlu0 %414  ;;  %v476_v4 = vsel %vm473_vm5, %v1931_v60, %v1925_v45 }
  0xa5   : > { %v426_v58 = vsel %vm424_vm6, %v2346_v56, %v417_v44 }
  0xa6   : > { %1833 = vmatpush.msk.msra.mxu2 %vm2312_vm3, %v428_v57  ;;  %v1979_v9 = vpop.permute.xlu2 %1978 }
  0xa7   : > { %v1980_v41 = vunpack.i.l.bf16 %v1979_v9  ;;  %v1981_v44 = vunpack.i.h.bf16 %v1979_v9 }
  0xa8   : > { %1834 = vmatpush.msk.msra.mxu2 %vm2312_vm3, %v426_v58 }
  0xa9   : > { %v384_v46 = vsel %vm383_vm8, %v1981_v44, %v2343_v55 }
  0xaa   : > { %v503_v61 = vpop.permute.xlu1 %502 }
  0xab   : > { %v515_v62 = vsel %vm514_vm1, %v503_v61, %v505_v25  ;;  %2009 = vrot.lane.b32.xlu1 %v2153_v0, %s2156_s26 }
  0xac   : > { %v2365_v1 = vpop.permute.xlu0 %1948  ;;  %1818 = vmatpush.msk.msra.mxu0 %vm2308_vm2, %v515_v62 }
  0xad   : > { %v1951_v2 = vunpack.i.h.bf16 %v2365_v1  ;;  %v1950_v3 = vunpack.i.l.bf16 %v2365_v1 }
  0xae   : > { %1819 = vmatpush.msk.msra.mxu0 %vm2361_vm7, %v476_v4  ;;  %v587_v22 = vpop.permute.xlu2 %586 }
  0xaf   : > { %v387_v5 = vsel %vm383_vm8, %v1950_v3, %v1951_v2  ;;  %v386_v11 = vsel %vm383_vm8, %v1980_v41, %v1950_v3 }
  0xb0   : > { %1835 = vmatpush.msk.msra.mxu2 %vm2325_vm4, %v387_v5 }
  0xb2   : > { %1836 = vmatpush.msk.msra.mxu2 %vm2325_vm4, %v385_v8  ;;  %v462_v10 = vpop.permute.xlu1 %461 }
  0xb3   : > { %v474_v14 = vsel %vm473_vm5, %v462_v10, %v464_v48  ;;  %2029 = vrot.lane.b32.xlu1 %v2153_v0, %s2161_s6 }
  0xb4   : > { %v2390_v15 = vpop.permute.xlu0 %1953  ;;  %1820 = vmatpush.msk.msra.mxu0 %vm2361_vm7, %v474_v14 }
  0xb5   : > { %v1956_v16 = vunpack.i.h.bf16 %v2390_v15  ;;  %v1955_v17 = vunpack.i.l.bf16 %v2390_v15 }
  0xb6   : > { %665 = vmatpush.msra.mxu0 %v2153_v0 }
  0xb7   : > { %v346_v18 = vsel %vm342_vm9, %v1955_v17, %v1956_v16 }
  0xb8   : > { %711 = vmatpush.msra.mxu2 %v346_v18  ;;  %666 = vmatpush.msra.mxu0 %v2233_v6 }
  0xba   : > { %712 = vmatpush.msra.mxu2 %v344_v19  ;;  %v1969_v21 = vpop.permute.xlu1 %1968  ;;  %v1804_v19 = vld [vmem:[%s2944_s2 + $0x4] sm:$0xf] }
  0xbb   : > { %v1971_v25 = vunpack.i.h.bf16 %v1969_v21  ;;  %v1970_v26 = vunpack.i.l.bf16 %v1969_v21 }
  0xbc   : > { %v1964_v27 = vpop.permute.xlu0 %1963 }
  0xbd   : > { %v1966_v28 = vunpack.i.h.bf16 %v1964_v27  ;;  %v1965_v29 = vunpack.i.l.bf16 %v1964_v27  ;;  %v595_v6 = vsel %vm592_vm10, %v587_v22, %v1970_v26  ;;  %v596_v30 = vsel %vm592_vm10, %v1970_v26, %v1971_v25 }
  0xbe   : > { %1827 = vmatpush.msk.msra.mxu1 %vm2361_vm7, %v595_v6  ;;  %1839 = vmatpush.msk.msra.mxu3 %vm2325_vm4, %v596_v30 }
  0xbf   : > { %v305_v32 = vsel %vm301_vm11, %v1965_v29, %v1966_v28 }
  0xc0   : > { %1837 = vmatpush.msk.msra.mxu2 %vm2312_vm3, %v305_v32 }
  0xc2   : > { %v1974_v35 = vpop.permute.xlu1 %1973 }
  0xc3   : > { %v1976_v36 = vunpack.i.h.bf16 %v1974_v35  ;;  %v1975_v37 = vunpack.i.l.bf16 %v1974_v35 }
  0xc4   : > { %v294_v38 = vpop.permute.xlu0 %293 }
  0xc5   : > { %v303_v42 = vsel %vm301_vm11, %v2335_v51, %v294_v38  ;;  %v427_v43 = vsel %vm424_vm6, %v1975_v37, %v1935_v54  ;;  %v425_v45 = vsel %vm424_vm6, %v1976_v36, %v2346_v56 }
  0xc6   : > { %1838 = vmatpush.msk.msra.mxu2 %vm2312_vm3, %v303_v42  ;;  %1821 = vmatpush.msk.msra.mxu0 %vm2308_vm2, %v427_v43 }
  0xc7   : > { %715 = vmatmul.f32.vlgmr.msra.gmra.mxu2 %v2402_v20 }
  0xc8   : > { %1822 = vmatpush.msk.msra.mxu0 %vm2308_vm2, %v425_v45 }
  0xca   : > { %1823 = vmatpush.msk.msra.mxu0 %vm2361_vm7, %v386_v11  ;;  %v1989_v50 = vpop.permute.xlu1 %1988 }
  0xcb   : > { %v1990_v55 = vunpack.i.l.bf16 %v1989_v50  ;;  %v1991_v57 = vunpack.i.h.bf16 %v1989_v50 }
  0xcc   : > { %v585_v48 = vpop.permute.xlu0 %584  ;;  %1824 = vmatpush.msk.msra.mxu0 %vm2361_vm7, %v384_v46 }
  0xcd   : > { %v594_v49 = vsel %vm592_vm10, %v2355_v59, %v585_v48  ;;  %v304_v60 = vsel %vm301_vm11, %v1990_v55, %v1965_v29  ;;  %v302_v62 = vsel %vm301_vm11, %v1991_v57, %v2335_v51 }
  0xce   : > { %1840 = vmatpush.msk.msra.mxu3 %vm2325_vm4, %v594_v49 }
  0xcf   : > { %1802 = vmatmul.msk.f32.vlgmr.msra.gmra.mxu3 %vm342_vm9, %v2404_v23 }
  0xd4   : > { %v1984_v52 = vpop.permute.xlu0 %1983 }
  0xd5   : > { %v1986_v53 = vunpack.i.h.bf16 %v1984_v52  ;;  %v1985_v54 = vunpack.i.l.bf16 %v1984_v52 }
  0xd7   : > { %v345_v56 = vsel %vm342_vm9, %v1985_v54, %v1955_v17  ;;  %v343_v58 = vsel %vm342_vm9, %v1986_v53, %v1960_v13 }
  0xd8   : > { %671 = vmatpush.msra.mxu0 %v345_v56 }
  0xda   : > { %672 = vmatpush.msra.mxu0 %v343_v58 }
  0xdc   : > { %v581_v61 = vpop.permute.xlu0 %580  ;;  %1825 = vmatpush.msk.msra.mxu0 %vm2308_vm2, %v304_v60 }
  0xdd   : > { %v593_v1 = vsel %vm592_vm10, %v581_v61, %v2355_v59 }
  0xde   : > { %1826 = vmatpush.msk.msra.mxu0 %vm2308_vm2, %v302_v62  ;;  %1828 = vmatpush.msk.msra.mxu1 %vm2361_vm7, %v593_v1  ;;  %v2612_v62 = vld.sshfl [vmem:[#allocation1 + $0x8] sm:$0xff pattern:$0x75316420]  ;;  %v2614_v1 = vld.sshfl [vmem:[#allocation1] sm:$0xff pattern:$0x75316420] }
  0xdf   : > { %675 = vmatmul.f32.vlgmr.msra.gmra.mxu0 %v2402_v20  ;;  %1801 = vmatmul.msk.f32.vlgmr.msra.gmra.mxu1 %vm342_vm9, %v2404_v23  ;;  %v2535_v20 = vpop.permute.xlu2 %1994 }
  0xe0   : > { %v1996_v37 = vunpack.i.l.bf16 %v2535_v20 }
  0xe4   : > { %v2555_v24 = vpop.permute.xlu0 %2004 }
  0xe5   : > { %v2007_v43 = vunpack.i.h.bf16 %v2555_v24 }
  0xe7   : > { %v2549_v22 = vpop.permute.xlu2 %2019 }
  0xec   : > { %v2564_v29 = vpop.permute.xlu0 %2014 }
  0xed   : > { %v2017_v50 = vunpack.i.h.bf16 %v2564_v29 }
  0xf4   : > { %v2576_v32 = vpop.permute.xlu0 %2024 }
 0x10d   : > { %v650_v31 = vpop.permute.xlu1 %649 }
 0x115   : > { %v2537_v21 = vpop.permute.xlu1 %1999 }
 0x116   : > { %v2001_v44 = vunpack.i.l.bf16 %v2537_v21 }
 0x118   : > { %v979_v53 = vsel %vm514_vm1, %v2007_v43, %v2001_v44  ;;  %v2022_v43 = vunpack.i.h.bf16 %v2549_v22 }
 0x11d   : > { %v2551_v23 = vpop.permute.xlu1 %2009 }
 0x11e   : > { %v2011_v52 = vunpack.i.l.bf16 %v2551_v23 }
 0x120   : > { %v939_v56 = vsel %vm473_vm5, %v2017_v50, %v2011_v52 }
 0x125   : > { %v2559_v25 = vpop.permute.xlu1 %2029 }
 0x126   : > { %v2032_v27 = vunpack.i.h.bf16 %v2559_v25  ;;  %v2031_v28 = vunpack.i.l.bf16 %v2559_v25 }
 0x128   : > { %v1055_v6 = vsel %vm592_vm10, %v2031_v28, %v2032_v27 }
 0x129   : > { %1851 = vmatpush.msk.msrb.mxu3 %vm2361_vm7, %v1055_v6 }
 0x14a   : > { %v716_v2 = vpop.f32.mrf.mxu2 }
 0x14b   : > { %v717_v3 = vadd.f32 %v716_v2, %v650_v31 }
 0x152   : > { %v736_v4 = vpop.f32.mrf.mxu3 }
 0x153   : > { %v737_v5 = vadd.f32 %v736_v4, %v717_v3  ;;  %v1997_v3 = vunpack.i.h.bf16 %v2535_v20 }
 0x155   : > { %v740_v51 = vmax.f32 %v737_v5, 0.0 }
 0x157   : > { %v744_v7 = vrot.slane %v740_v51, 4 }
 0x159   : > { %748 = vst [vmem:[#allocation2 + $0x18] sm:$0xf0] %v744_v7 }
 0x15c   : > { %v676_v59 = vpop.f32.mrf.mxu0  ;;  %v696_v8 = vpop.f32.mrf.mxu1 }
 0x15d   : > { %v677_v9 = vadd.f32 %v676_v59, %v650_v31  ;;  %v1807_v31 = vld [vmem:[%s2943_s1 + $0x10] sm:$0xff]  ;;  %v2002_v59 = vunpack.i.h.bf16 %v2537_v21 }
 0x15e   : > { %1571 = vst [vmem:[#allocation1] ss:$2 sm:$0xff] %v1807_v31 }
 0x15f   : > { %v697_v10 = vadd.f32 %v696_v8, %v677_v9  ;;  %v1020_v9 = vsel %vm555_vm0, %v1996_v37, %v1997_v3  ;;  %v980_v20 = vsel %vm514_vm1, %v2001_v44, %v2002_v59 }
 0x160   : > { %v2483_v16 = vld [vmem:[#allocation2 + $0x18] sm:$0xff] }
 0x161   : > { %v739_v12 = vmax.f32 %v697_v10, 0.0  ;;  %v2038_v17 = vpack.i.bf16 0.0, %v2483_v16  ;;  %v2021_v10 = vunpack.i.l.bf16 %v2549_v22  ;;  %v2027_v22 = vunpack.i.h.bf16 %v2576_v32 }
 0x163   : > { %v743_v13 = vrot.slane %v739_v12, 4 }
 0x165   : > { %747 = vst [vmem:[#allocation2] sm:$0xf0] %v743_v13 }
 0x16c   : > { %v2474_v14 = vld [vmem:[#allocation2] sm:$0xff] }
 0x16d   : > { %965 = vrot.lane.b32.xlu2 %v2474_v14, %s2154_s20  ;;  %879 = vrot.lane.b32.xlu0 %v2474_v14, %s2157_s27  ;;  %v2033_v15 = vpack.i.bf16 %v2474_v14, %v2153_v0  ;;  %v2058_v18 = vpack.i.bf16 %v2483_v16, %v2474_v14 }
 0x16f   : > { %2034 = vrot.lane.b32.xlu1 %v2033_v15, %s2155_s21 }
 0x175   : > { %2039 = vrot.lane.b32.xlu0 %v2038_v17, %s2155_s21  ;;  %839 = vrot.lane.b32.xlu2 %v2474_v14, %s2158_s28 }
 0x177   : > { %925 = vrot.lane.b32.xlu1 %v2474_v14, %s2156_s26 }
 0x17d   : > { %2049 = vrot.lane.b32.xlu0 %v2153_v0, %s2160_s30  ;;  %967 = vrot.lane.b32.xlu2 %v2483_v16, %s2154_s20 }
 0x17f   : > { %2044 = vrot.lane.b32.xlu1 %v2153_v0, %s2159_s29 }
 0x185   : > { %841 = vrot.lane.b32.xlu0 %v2483_v16, %s2158_s28  ;;  %927 = vrot.lane.b32.xlu2 %v2483_v16, %s2156_s26 }
 0x187   : > { %881 = vrot.lane.b32.xlu1 %v2483_v16, %s2157_s27 }
 0x18d   : > { %1043 = vrot.lane.b32.xlu0 %v2483_v16, %s2161_s6  ;;  %1041 = vrot.lane.b32.xlu2 %v2474_v14, %s2161_s6 }
 0x18f   : > { %2054 = vrot.lane.b32.xlu1 %v2153_v0, %s2157_s27 }
 0x195   : > { %765 = vrot.lane.b32.xlu0 %v2483_v16, %s2160_s30  ;;  %2059 = vrot.lane.b32.xlu2 %v2058_v18, %s2159_s29 }
 0x197   : > { %2064 = vrot.lane.b32.xlu1 %v2153_v0, %s2158_s28 }
 0x19d   : > { %2074 = vrot.lane.b32.xlu0 %v2153_v0, %s2161_s6  ;;  %763 = vrot.lane.b32.xlu2 %v2474_v14, %s2160_s30 }
 0x19f   : > { %2079 = vrot.lane.b32.xlu1 %v2153_v0, %s2160_s30 }
 0x1a5   : > { %2095 = vrot.lane.b32.xlu0 %v2153_v0, %s2157_s27  ;;  %2069 = vrot.lane.b32.xlu2 %v2153_v0, %s2159_s29 }
 0x1a7   : > { %1421 = vrot.lane.b32.xlu1 %v2474_v14, %s2154_s20 }
 0x1ad   : > { %2100 = vrot.lane.b32.xlu0 %v2153_v0, %s2156_s26  ;;  %1111 = vperm.xlu2 %2083, %v1804_v19   ;;  %v2012_v19 = vunpack.i.h.bf16 %v2551_v23  ;;  %v2016_v23 = vunpack.i.l.bf16 %v2564_v29 }
 0x1af   : > { %2085 = vrot.lane.b32.xlu1 %v2153_v0, %s2155_s21  ;;  %v940_v6 = vsel %vm473_vm5, %v2011_v52, %v2012_v19 }
 0x1b5   : > { %1295 = vrot.lane.b32.xlu0 %v2474_v14, %s2158_s28  ;;  %1381 = vrot.lane.b32.xlu2 %v2474_v14, %s2156_s26 }
 0x1b7   : > { %2105 = vrot.lane.b32.xlu1 %v2153_v0, %s2158_s28 }
 0x1bd   : > { %1383 = vrot.lane.b32.xlu0 %v2483_v16, %s2156_s26  ;;  %2090 = vrot.lane.b32.xlu2 %v2153_v0, %s2154_s20 }
 0x1bf   : > { %2115 = vrot.lane.b32.xlu1 %v2153_v0, %s2160_s30 }
 0x1c5   : > { %1335 = vrot.lane.b32.xlu2 %v2474_v14, %s2157_s27 }
 0x1c7   : > { %v966_v26 = vpop.permute.xlu2 %965  ;;  %2120 = vrot.lane.b32.xlu1 %v2058_v18, %s2155_s21  ;;  %v2006_v18 = vunpack.i.l.bf16 %v2555_v24 }
 0x1cd   : > { %2110 = vrot.lane.b32.xlu2 %v2033_v15, %s2159_s29 }
 0x1cf   : > { %v2572_v30 = vpop.permute.xlu2 %839 }
 0x1d5   : > { %1423 = vrot.lane.b32.xlu2 %v2483_v16, %s2154_s20 }
 0x1d7   : > { %v968_v33 = vpop.permute.xlu2 %967 }
 0x1d8   : > { %v977_v54 = vsel %vm514_vm1, %v966_v26, %v968_v33  ;;  %v978_v26 = vsel %vm514_vm1, %v968_v33, %v2006_v18 }
 0x1df   : > { %v2578_v34 = vpop.permute.xlu0 %879  ;;  %v2580_v35 = vpop.permute.xlu2 %927 }
 0x1e0   : > { %v938_v33 = vsel %vm473_vm5, %v2580_v35, %v2016_v23 }
 0x1e1   : > { %v2035_v36 = vpop.permute.xlu1 %2034 }
 0x1e2   : > { %v2036_v38 = vunpack.i.l.bf16 %v2035_v36  ;;  %v2037_v45 = vunpack.i.h.bf16 %v2035_v36  ;;  %v2026_v36 = vunpack.i.l.bf16 %v2576_v32 }
 0x1e4   : > { %v1019_v41 = vsel %vm555_vm0, %v2036_v38, %v1996_v37  ;;  %v852_v31 = vsel %vm383_vm8, %v2026_v36, %v2027_v22 }
 0x1e5   : > { %1121 = vmatpush.msrb.mxu1 %v1019_v41 }
 0x1e7   : > { %v2040_v42 = vpop.permute.xlu0 %2039  ;;  %v1042_v49 = vpop.permute.xlu2 %1041 }
 0x1e8   : > { %v2041_v11 = vunpack.i.l.bf16 %v2040_v42  ;;  %v2042_v4 = vunpack.i.h.bf16 %v2040_v42 }
 0x1e9   : > { %v926_v46 = vpop.permute.xlu1 %925 }
 0x1ea   : > { %v1017_v48 = vsel %vm555_vm0, %v2037_v45, %v2041_v11  ;;  %v937_v58 = vsel %vm473_vm5, %v926_v46, %v2580_v35  ;;  %v1018_v15 = vsel %vm555_vm0, %v2041_v11, %v2042_v4 }
 0x1eb   : > { %1122 = vmatpush.msrb.mxu1 %v1017_v48 }
 0x1ed   : > { %1841 = vmatpush.msk.msrb.mxu1 %vm2308_vm2, %v979_v53 }
 0x1ef   : > { %v2593_v55 = vpop.permute.xlu0 %2049  ;;  %1842 = vmatpush.msk.msrb.mxu1 %vm2308_vm2, %v977_v54  ;;  %v2606_v60 = vpop.permute.xlu2 %2059 }
 0x1f0   : > { %v2061_v35 = vunpack.i.l.bf16 %v2606_v60  ;;  %v2051_v50 = vunpack.i.l.bf16 %v2593_v55 }
 0x1f1   : > { %v2598_v57 = vpop.permute.xlu1 %2044  ;;  %1843 = vmatpush.msk.msrb.mxu1 %vm2361_vm7, %v939_v56 }
 0x1f2   : > { %v2046_v41 = vunpack.i.l.bf16 %v2598_v57 }
 0x1f3   : > { %1844 = vmatpush.msk.msrb.mxu1 %vm2361_vm7, %v937_v58  ;;  %v2047_v58 = vunpack.i.h.bf16 %v2598_v57  ;;  %v2052_v57 = vunpack.i.h.bf16 %v2593_v55 }
 0x1f5   : > { %1127 = vmatpush.msrb.mxu1 %v2153_v0  ;;  %v816_v4 = vsel %vm342_vm9, %v2046_v41, %v2047_v58 }
 0x1f7   : > { %v2609_v61 = vpop.permute.xlu0 %841  ;;  %1128 = vmatpush.msrb.mxu1 %v2474_v14  ;;  %v2620_v5 = vpop.permute.xlu2 %763 }
 0x1f9   : > { %v882_v2 = vpop.permute.xlu1 %881 }
 0x1fa   : > { %v890_v56 = vsel %vm424_vm6, %v2578_v34, %v882_v2  ;;  %v850_v2 = vsel %vm383_vm8, %v2572_v30, %v2609_v61 }
 0x1ff   : > { %v2622_v51 = vpop.permute.xlu0 %1043  ;;  %v2070_v24 = vpop.permute.xlu2 %2069 }
 0x200   : > { %v1053_v7 = vsel %vm592_vm10, %v1042_v49, %v2622_v51  ;;  %v2071_v42 = vunpack.i.l.bf16 %v2070_v24  ;;  %v2072_v44 = vunpack.i.h.bf16 %v2070_v24  ;;  %v892_v49 = vsel %vm424_vm6, %v2021_v10, %v2022_v43  ;;  %v1672_v24 = vld [vmem:[%s2946_s4] sm:$0xf] }
 0x201   : > { %v2055_v8 = vpop.permute.xlu1 %2054  ;;  %1852 = vmatpush.msk.msrb.mxu3 %vm2361_vm7, %v1053_v7 }
 0x202   : > { %v2057_v12 = vunpack.i.h.bf16 %v2055_v8  ;;  %v2056_v13 = vunpack.i.l.bf16 %v2055_v8  ;;  %1805 = vmatmul.msk.f32.vlgmr.msrb.gmra.mxu3 %vm342_vm9, %v2612_v62  ;;  %v815_v46 = vsel %vm342_vm9, %v2071_v42, %v2046_v41  ;;  %v813_v54 = vsel %vm342_vm9, %v2072_v44, %v2061_v35 }
 0x203   : > { %1161 = vmatpush.msra.mxu3 %v1020_v9 }
 0x204   : > { %v891_v17 = vsel %vm424_vm6, %v2056_v13, %v2021_v10  ;;  %v889_v21 = vsel %vm424_vm6, %v2057_v12, %v2578_v34  ;;  %v2062_v34 = vunpack.i.h.bf16 %v2606_v60 }
 0x205   : > { %1162 = vmatpush.msra.mxu3 %v1018_v15  ;;  %1845 = vmatpush.msk.msrb.mxu1 %vm2308_vm2, %v891_v17 }
 0x206   : > { %v814_v60 = vsel %vm342_vm9, %v2061_v35, %v2062_v34 }
 0x207   : > { %1853 = vmatpush.msk.msra.mxu3 %vm2312_vm3, %v980_v20  ;;  %1846 = vmatpush.msk.msrb.mxu1 %vm2308_vm2, %v889_v21  ;;  %v766_v11 = vpop.permute.xlu0 %765 }
 0x208   : > { %v774_v61 = vsel %vm301_vm11, %v2620_v5, %v766_v11 }
 0x209   : > { %1854 = vmatpush.msk.msra.mxu3 %vm2312_vm3, %v978_v26  ;;  %v2065_v28 = vpop.permute.xlu1 %2064 }
 0x20a   : > { %v2067_v37 = vunpack.i.h.bf16 %v2065_v28  ;;  %v2066_v38 = vunpack.i.l.bf16 %v2065_v28 }
 0x20b   : > { %1855 = vmatpush.msk.msra.mxu3 %vm2325_vm4, %v940_v6 }
 0x20c   : > { %v851_v29 = vsel %vm383_vm8, %v2066_v38, %v2026_v36  ;;  %v849_v45 = vsel %vm383_vm8, %v2067_v37, %v2572_v30  ;;  %v776_v30 = vsel %vm301_vm11, %v2051_v50, %v2052_v57 }
 0x20d   : > { %1856 = vmatpush.msk.msra.mxu3 %vm2325_vm4, %v938_v33  ;;  %1847 = vmatpush.msk.msrb.mxu1 %vm2361_vm7, %v851_v29 }
 0x20f   : > { %1167 = vmatpush.msra.mxu3 %v2153_v0  ;;  %1848 = vmatpush.msk.msrb.mxu1 %vm2361_vm7, %v849_v45  ;;  %v2075_v7 = vpop.permute.xlu0 %2074 }
 0x210   : > { %v2076_v59 = vunpack.i.l.bf16 %v2075_v7  ;;  %v2077_v8 = vunpack.i.h.bf16 %v2075_v7 }
 0x211   : > { %1168 = vmatpush.msra.mxu3 %v2483_v16  ;;  %v2080_v48 = vpop.permute.xlu1 %2079  ;;  %1133 = vmatpush.msrb.mxu1 %v815_v46 }
 0x212   : > { %v2082_v52 = vunpack.i.h.bf16 %v2080_v48  ;;  %v2081_v53 = vunpack.i.l.bf16 %v2080_v48  ;;  %v1056_v55 = vsel %vm592_vm10, %v2032_v27, %v2076_v59  ;;  %v1054_v9 = vsel %vm592_vm10, %v2622_v51, %v2077_v8 }
 0x213   : > { %1857 = vmatpush.msk.msra.mxu3 %vm2312_vm3, %v892_v49  ;;  %1134 = vmatpush.msrb.mxu1 %v813_v54 }
 0x214   : > { %v775_v32 = vsel %vm301_vm11, %v2081_v53, %v2051_v50  ;;  %v773_v3 = vsel %vm301_vm11, %v2082_v52, %v2620_v5  ;;  %v1112_v5 = vpop.permute.xlu2 %1111 }
 0x215   : > { %1858 = vmatpush.msk.msra.mxu3 %vm2312_vm3, %v890_v56  ;;  %1849 = vmatpush.msk.msrb.mxu1 %vm2308_vm2, %v775_v32 }
 0x217   : > { %1859 = vmatpush.msk.msra.mxu3 %vm2325_vm4, %v852_v31  ;;  %1850 = vmatpush.msk.msrb.mxu1 %vm2308_vm2, %v773_v3  ;;  %v2783_v41 = vpop.permute.xlu0 %2095 }
 0x218   : > { %1137 = vmatmul.f32.vlgmr.msrb.gmra.mxu1 %v2614_v1 }
 0x219   : > { %1860 = vmatpush.msk.msra.mxu3 %vm2325_vm4, %v850_v2 }
 0x21b   : > { %1173 = vmatpush.msra.mxu3 %v816_v4 }
 0x21c   : > { %v2759_v26 = vpop.permute.xlu2 %1381 }
 0x21d   : > { %1174 = vmatpush.msra.mxu3 %v814_v60 }
 0x21f   : > { %1861 = vmatpush.msk.msra.mxu3 %vm2312_vm3, %v776_v30  ;;  %v2101_v43 = vpop.permute.xlu0 %2100 }
 0x221   : > { %1862 = vmatpush.msk.msra.mxu3 %vm2312_vm3, %v774_v61 }
 0x222   : > { %1177 = vmatmul.f32.vlgmr.msra.gmra.mxu3 %v2614_v1 }
 0x223   : > { %1863 = vmatpush.msk.msrb.mxu3 %vm2325_vm4, %v1056_v55 }
 0x224   : > { %v2091_v23 = vpop.permute.xlu2 %2090 }
 0x225   : > { %1864 = vmatpush.msk.msrb.mxu3 %vm2325_vm4, %v1054_v9  ;;  %v2093_v59 = vunpack.i.h.bf16 %v2091_v23  ;;  %v2092_v30 = vunpack.i.l.bf16 %v2091_v23 }
 0x227   : > { %v2789_v35 = vpop.permute.xlu0 %1295 }
 0x22a   : > { %1806 = vmatmul.msk.f32.vlgmr.msrb.gmra.mxu3 %vm342_vm9, %v2612_v62 }
 0x22c   : > { %v2775_v6 = vpop.permute.xlu2 %1335 }
 0x22f   : > { %v1384_v22 = vpop.permute.xlu0 %1383 }
 0x234   : > { %v2779_v36 = vpop.permute.xlu2 %2110 }
 0x23c   : > { %v1424_v38 = vpop.permute.xlu2 %1423 }
 0x285   : > { %v1158_v12 = vpop.f32.mrf.mxu3 }
 0x295   : > { %v1138_v10 = vpop.f32.mrf.mxu1 }
 0x296   : > { %v1139_v1 = vadd.f32 %v1138_v10, %v1112_v5 }
 0x298   : > { %v1159_v13 = vadd.f32 %v1158_v12, %v1139_v1  ;;  %v1434_v12 = vsel %vm514_vm1, %v1424_v38, %v2093_v59  ;;  %v2815_v1 = vld.sshfl [vmem:[#allocation1] sm:$0xff pattern:$0x75316420] }
 0x29a   : > { %v1201_v25 = vmax.f32 %v1159_v13, 0.0  ;;  %v2103_v13 = vunpack.i.h.bf16 %v2101_v43 }
 0x29c   : > { %1203 = vst [vmem:[#allocation2 + $0x20] sm:$0xf] %v1201_v25  ;;  %v2821_v25 = vld.sshfl [vmem:[#allocation1 + $0x8] sm:$0xff pattern:$0x75316420]  ;;  %v1394_v23 = vsel %vm473_vm5, %v1384_v22, %v2103_v13 }
 0x2a3   : > { %v2721_v27 = vld [vmem:[#allocation2 + $0x20] sm:$0xff] }
 0x2a4   : > { %1427 = vrot.lane.b32.xlu2 %v2721_v27, %s2154_s20  ;;  %1341 = vrot.lane.b32.xlu1 %v2721_v27, %s2157_s27  ;;  %v2124_v62 = vpack.i.bf16 %v2721_v27, %v2153_v0 }
 0x2a5   : > { %v1178_v15 = vpop.f32.mrf.mxu3  ;;  %1387 = vrot.lane.b32.xlu0 %v2721_v27, %s2156_s26 }
 0x2a6   : > { %v1179_v51 = vadd.f32 %v1178_v15, %v1112_v5  ;;  %v2102_v5 = vunpack.i.l.bf16 %v2101_v43  ;;  %v1721_v15 = vld [vmem:[%s2218_s25] sm:$0xff] }
 0x2a7   : > { %1723 = vst [vmem:[#allocation1] ss:$2 sm:$0xff] %v1721_v15 }
 0x2ac   : > { %1301 = vrot.lane.b32.xlu2 %v2721_v27, %s2158_s28  ;;  %2125 = vrot.lane.b32.xlu1 %v2124_v62, %s2159_s29 }
 0x2ad   : > { %v1198_v17 = vpop.f32.mrf.mxu3 }
 0x2ae   : > { %v1199_v18 = vadd.f32 %v1198_v17, %v1179_v51 }
 0x2b0   : > { %v1202_v19 = vmax.f32 %v1199_v18, 0.0 }
 0x2b2   : > { %1204 = vst [vmem:[#allocation2 + $0x28] sm:$0xf] %v1202_v19  ;;  %v1393_v19 = vsel %vm473_vm5, %v2759_v26, %v1384_v22 }
 0x2b4   : > { %1225 = vrot.lane.b32.xlu2 %v2721_v27, %s2160_s30 }
 0x2b9   : > { %v2736_v20 = vld [vmem:[#allocation2 + $0x28] sm:$0xff] }
 0x2ba   : > { %1389 = vrot.lane.b32.xlu1 %v2736_v20, %s2156_s26  ;;  %v2129_v21 = vpack.i.bf16 %v2736_v20, %v2721_v27  ;;  %v2134_v28 = vpack.i.bf16 %v2483_v16, %v2736_v20 }
 0x2bc   : > { %2130 = vrot.lane.b32.xlu0 %v2129_v21, %s2155_s21  ;;  %1499 = vrot.lane.b32.xlu2 %v2483_v16, %s2161_s6 }
 0x2c2   : > { %1219 = vrot.lane.b32.xlu1 %v2474_v14, %s2160_s30 }
 0x2c4   : > { %1429 = vrot.lane.b32.xlu0 %v2736_v20, %s2154_s20  ;;  %1303 = vrot.lane.b32.xlu2 %v2736_v20, %s2158_s28 }
 0x2ca   : > { %1503 = vrot.lane.b32.xlu1 %v2721_v27, %s2161_s6 }
 0x2cc   : > { %1337 = vrot.lane.b32.xlu0 %v2483_v16, %s2157_s27  ;;  %1505 = vrot.lane.b32.xlu2 %v2736_v20, %s2161_s6 }
 0x2d2   : > { %1497 = vrot.lane.b32.xlu1 %v2474_v14, %s2161_s6 }
 0x2d4   : > { %1297 = vrot.lane.b32.xlu0 %v2483_v16, %s2158_s28  ;;  %2140 = vrot.lane.b32.xlu2 %v2153_v0, %s2161_s6  ;;  %v1422_v0 = vpop.permute.xlu1 %1421  ;;  %s224_s28 = scalar_lea.vmem %s2947_s5, %s1815_s22 }
 0x2d5   : > { %v1433_v10 = vsel %vm514_vm1, %v1422_v0, %v1424_v38  ;;  %v2097_v0 = vunpack.i.l.bf16 %v2783_v41 }
 0x2da   : > { %1221 = vrot.lane.b32.xlu1 %v2483_v16, %s2160_s30 }
 0x2dc   : > { %1343 = vrot.lane.b32.xlu0 %v2736_v20, %s2157_s27  ;;  %v2086_v37 = vpop.permute.xlu1 %2085 }
 0x2dd   : > { %v2088_v54 = vunpack.i.h.bf16 %v2086_v37  ;;  %v2087_v56 = vunpack.i.l.bf16 %v2086_v37 }
 0x2e2   : > { %1675 = vperm.xlu1 %1992, %v1672_v24  }
 0x2e4   : > { %2135 = vrot.lane.b32.xlu0 %v2134_v28, %s2159_s29  ;;  %v2781_v33 = vpop.permute.xlu1 %2105  ;;  %v2098_v28 = vunpack.i.h.bf16 %v2783_v41 }
 0x2e5   : > { %v2107_v37 = vunpack.i.l.bf16 %v2781_v33 }
 0x2ec   : > { %1227 = vrot.lane.b32.xlu0 %v2736_v20, %s2160_s30  ;;  %v2785_v29 = vpop.permute.xlu1 %2115 }
 0x2f4   : > { %v2121_v45 = vpop.permute.xlu1 %2120 }
 0x2f5   : > { %v2123_v58 = vunpack.i.h.bf16 %v2121_v45  ;;  %v2122_v31 = vunpack.i.l.bf16 %v2121_v45  ;;  %v1345_v45 = vsel %vm424_vm6, %v2098_v28, %v2775_v6  ;;  %v1724_v28 = vld.sshfl [vmem:[#allocation1] sm:$0xff pattern:$0x75316420] }
 0x2f7   : > { %v1473_v4 = vsel %vm555_vm0, %v2122_v31, %v2123_v58  ;;  %v1474_v7 = vsel %vm555_vm0, %v2123_v58, %v2088_v54  ;;  %v2112_v58 = vunpack.i.l.bf16 %v2779_v36  ;;  %v2117_v31 = vunpack.i.l.bf16 %v2785_v29 }
 0x2fe   : > { %v1428_v42 = vpop.permute.xlu2 %1427 }
 0x306   : > { %v2787_v44 = vpop.permute.xlu2 %1301 }
 0x30e   : > { %v2791_v11 = vpop.permute.xlu2 %1225 }
 0x316   : > { %v2793_v46 = vpop.permute.xlu1 %1341  ;;  %v2795_v48 = vpop.permute.xlu2 %1499 }
 0x317   : > { %v1388_v50 = vpop.permute.xlu0 %1387  ;;  %v1347_v38 = vsel %vm424_vm6, %v2097_v0, %v2793_v46 }
 0x31e   : > { %v2797_v49 = vpop.permute.xlu1 %2125  ;;  %v2799_v52 = vpop.permute.xlu2 %1303 }
 0x31f   : > { %v2127_v54 = vunpack.i.l.bf16 %v2797_v49 }
 0x326   : > { %v1506_v61 = vpop.permute.xlu2 %1505 }
 0x32c   : > { %v1390_v53 = vpop.permute.xlu1 %1389 }
 0x32d   : > { %v1395_v62 = vsel %vm473_vm5, %v1388_v50, %v1390_v53  ;;  %v1396_v51 = vsel %vm473_vm5, %v1390_v53, %v2102_v5  ;;  %v2128_v53 = vunpack.i.h.bf16 %v2797_v49 }
 0x32e   : > { %v2131_v32 = vpop.permute.xlu0 %2130  ;;  %v2141_v24 = vpop.permute.xlu2 %2140 }
 0x32f   : > { %v2133_v3 = vunpack.i.h.bf16 %v2131_v32  ;;  %v2132_v34 = vunpack.i.l.bf16 %v2131_v32  ;;  %v2142_v26 = vunpack.i.l.bf16 %v2141_v24  ;;  %v2113_v32 = vunpack.i.h.bf16 %v2779_v36 }
 0x330   : > { %v2118_v36 = vunpack.i.h.bf16 %v2785_v29  ;;  %v1308_v29 = vsel %vm383_vm8, %v2787_v44, %v2799_v52 }
 0x331   : > { %v1475_v2 = vsel %vm555_vm0, %v2132_v34, %v2133_v3  ;;  %v1476_v57 = vsel %vm555_vm0, %v2133_v3, %v2087_v56  ;;  %v1512_v22 = vsel %vm592_vm10, %v1506_v61, %v2142_v26  ;;  %v1269_v3 = vsel %vm342_vm9, %v2112_v58, %v2113_v32 }
 0x332   : > { %1577 = vmatpush.msrb.mxu2 %v1475_v2  ;;  %1617 = vmatpush.msrb.mxu0 %v1476_v57  ;;  %v1231_v2 = vsel %vm301_vm11, %v2117_v31, %v2791_v11 }
 0x334   : > { %1578 = vmatpush.msrb.mxu2 %v1473_v4  ;;  %1618 = vmatpush.msrb.mxu0 %v1474_v7  ;;  %v2805_v60 = vpop.permute.xlu1 %1219 }
 0x335   : > { %v1229_v63 = vsel %vm301_vm11, %v2118_v36, %v2805_v60 }
 0x336   : > { %v1430_v8 = vpop.permute.xlu0 %1429 }
 0x337   : > { %v1435_v55 = vsel %vm514_vm1, %v1428_v42, %v1430_v8  ;;  %v1436_v9 = vsel %vm514_vm1, %v1430_v8, %v2092_v30  ;;  %v2143_v42 = vunpack.i.h.bf16 %v2141_v24 }
 0x338   : > { %1865 = vmatpush.msk.msrb.mxu2 %vm2308_vm2, %v1435_v55  ;;  %1877 = vmatpush.msk.msrb.mxu0 %vm2312_vm3, %v1436_v9 }
 0x339   : > { %v1510_v56 = vsel %vm592_vm10, %v2795_v48, %v2143_v42 }
 0x33a   : > { %1866 = vmatpush.msk.msrb.mxu2 %vm2308_vm2, %v1433_v10  ;;  %1878 = vmatpush.msk.msrb.mxu0 %vm2312_vm3, %v1434_v12 }
 0x33c   : > { %1867 = vmatpush.msk.msrb.mxu2 %vm2361_vm7, %v1395_v62  ;;  %1879 = vmatpush.msk.msrb.mxu0 %vm2325_vm4, %v1396_v51  ;;  %v1504_v17 = vpop.permute.xlu1 %1503 }
 0x33d   : > { %v1511_v18 = vsel %vm592_vm10, %v1504_v17, %v1506_v61 }
 0x33e   : > { %v1338_v21 = vpop.permute.xlu0 %1337  ;;  %1868 = vmatpush.msk.msrb.mxu2 %vm2361_vm7, %v1393_v19  ;;  %1875 = vmatpush.msk.msra.mxu1 %vm2361_vm7, %v1511_v18 }
 0x33f   : > { %1880 = vmatpush.msk.msrb.mxu0 %vm2325_vm4, %v1394_v23  ;;  %v1346_v4 = vsel %vm424_vm6, %v2775_v6, %v1338_v21  ;;  %v1725_v21 = vld.sshfl [vmem:[#allocation1 + $0x8] sm:$0xff pattern:$0x75316420] }
 0x340   : > { %1583 = vmatpush.msrb.mxu2 %v2721_v27  ;;  %v1808_v27 = vld [vmem:[%s2944_s2 + $0x8] sm:$0xf] }
 0x341   : > { %1623 = vmatpush.msrb.mxu0 %v2736_v20  ;;  %1567 = vperm.xlu0 %2144, %v1808_v27   ;;  %v2108_v20 = vunpack.i.h.bf16 %v2781_v33  ;;  %v1307_v33 = vsel %vm383_vm8, %v2107_v37, %v2787_v44 }
 0x342   : > { %1584 = vmatpush.msrb.mxu2 %v2474_v14 }
 0x343   : > { %1624 = vmatpush.msrb.mxu0 %v2483_v16  ;;  %v1305_v49 = vsel %vm383_vm8, %v2108_v20, %v2789_v35 }
 0x344   : > { %1869 = vmatpush.msk.msrb.mxu2 %vm2308_vm2, %v1347_v38  ;;  %v1498_v41 = vpop.permute.xlu1 %1497 }
 0x345   : > { %v1509_v43 = vsel %vm592_vm10, %v1498_v41, %v2795_v48  ;;  %v1271_v48 = vsel %vm342_vm9, %v2127_v54, %v2128_v53 }
 0x346   : > { %v1298_v50 = vpop.permute.xlu0 %1297  ;;  %1870 = vmatpush.msk.msrb.mxu2 %vm2308_vm2, %v1345_v45  ;;  %1876 = vmatpush.msk.msra.mxu1 %vm2361_vm7, %v1509_v43 }
 0x347   : > { %1809 = vmatmul.msk.f32.vlgmr.msra.gmra.mxu1 %vm342_vm9, %v2821_v25  ;;  %v1306_v6 = vsel %vm383_vm8, %v2789_v35, %v1298_v50 }
 0x348   : > { %1887 = vmatpush.msk.msrb.mxu1 %vm2325_vm4, %v1512_v22  ;;  %1871 = vmatpush.msk.msrb.mxu2 %vm2361_vm7, %v1307_v33 }
 0x34a   : > { %1888 = vmatpush.msk.msrb.mxu1 %vm2325_vm4, %v1510_v56  ;;  %1872 = vmatpush.msk.msrb.mxu2 %vm2361_vm7, %v1305_v49 }
 0x34c   : > { %1589 = vmatpush.msrb.mxu2 %v1271_v48  ;;  %v1222_v61 = vpop.permute.xlu1 %1221 }
 0x34d   : > { %v1230_v47 = vsel %vm301_vm11, %v2805_v60, %v1222_v61 }
 0x34e   : > { %v1344_v34 = vpop.permute.xlu0 %1343  ;;  %1590 = vmatpush.msrb.mxu2 %v1269_v3 }
 0x34f   : > { %v1348_v57 = vsel %vm424_vm6, %v2793_v46, %v1344_v34  ;;  %1810 = vmatmul.msk.f32.vlgmr.msrb.gmra.mxu1 %vm342_vm9, %v2821_v25 }
 0x350   : > { %1873 = vmatpush.msk.msrb.mxu2 %vm2308_vm2, %v1231_v2  ;;  %1881 = vmatpush.msk.msrb.mxu0 %vm2312_vm3, %v1348_v57 }
 0x352   : > { %1874 = vmatpush.msk.msrb.mxu2 %vm2308_vm2, %v1229_v63  ;;  %1882 = vmatpush.msk.msrb.mxu0 %vm2312_vm3, %v1346_v4 }
 0x353   : > { %1593 = vmatmul.f32.vlgmr.msrb.gmra.mxu2 %v2815_v1 }
 0x354   : > { %1883 = vmatpush.msk.msrb.mxu0 %vm2325_vm4, %v1308_v29  ;;  %v1676_v18 = vpop.permute.xlu1 %1675 }
 0x356   : > { %v2136_v46 = vpop.permute.xlu0 %2135  ;;  %1884 = vmatpush.msk.msrb.mxu0 %vm2325_vm4, %v1306_v6 }
 0x357   : > { %v2138_v39 = vunpack.i.h.bf16 %v2136_v46  ;;  %v2137_v7 = vunpack.i.l.bf16 %v2136_v46 }
 0x359   : > { %v1272_v59 = vsel %vm342_vm9, %v2128_v53, %v2137_v7  ;;  %v1270_v30 = vsel %vm342_vm9, %v2113_v32, %v2138_v39 }
 0x35a   : > { %1629 = vmatpush.msrb.mxu0 %v1272_v59 }
 0x35c   : > { %1630 = vmatpush.msrb.mxu0 %v1270_v30 }
 0x35e   : > { %v1228_v44 = vpop.permute.xlu0 %1227 }
 0x35f   : > { %v1232_v52 = vsel %vm301_vm11, %v2791_v11, %v1228_v44 }
 0x360   : > { %1885 = vmatpush.msk.msrb.mxu0 %vm2312_vm3, %v1232_v52 }
 0x362   : > { %1886 = vmatpush.msk.msrb.mxu0 %vm2312_vm3, %v1230_v47 }
 0x363   : > { %1633 = vmatmul.f32.vlgmr.msrb.gmra.mxu0 %v2815_v1 }
 0x3b3   : > { %v1568_v35 = vpop.permute.xlu0 %1567 }
 0x3c4   : > { %v1614_v55 = vpop.f32.mrf.mxu1 }
 0x3cc   : > { %v1654_v13 = vpop.f32.mrf.mxu1 }
 0x3d6   : > { %v1594_v8 = vpop.f32.mrf.mxu2 }
 0x3d7   : > { %v1595_v9 = vadd.f32 %v1594_v8, %v1568_v35 }
 0x3d9   : > { %v1615_v5 = vadd.f32 %v1614_v55, %v1595_v9 }
 0x3db   : > { %v1657_v10 = vmax.f32 %v1615_v5, 0.0 }
 0x3dd   : > { %v1661_v12 = vrot.slane %v1657_v10, 4 }
 0x3df   : > { %1665 = vst [vmem:[#allocation2 + $0x20] sm:$0xf0] %v1661_v12 }
 0x3e0   : > { %v1634_v11 = vpop.f32.mrf.mxu0 }
 0x3e1   : > { %v1635_v25 = vadd.f32 %v1634_v11, %v1568_v35 }
 0x3e3   : > { %v1655_v15 = vadd.f32 %v1654_v13, %v1635_v25 }
 0x3e5   : > { %v1658_v62 = vmax.f32 %v1655_v15, 0.0 }
 0x3e6   : > { %v1669_v51 = vld [vmem:[#allocation2 + $0x20] sm:$0xff] }
 0x3e7   : > { %v1662_v60 = vrot.slane %v1658_v62, 4  ;;  %1695 = vmatpush.msra.mxu3 %v1669_v51 }
 0x3e9   : > { %1666 = vst [vmem:[#allocation2 + $0x28] sm:$0xf0] %v1662_v60  ;;  %1696 = vmatpush.msra.mxu3 %v2474_v14 }
 0x3ea   : > { %1811 = vmatmul.msk.f32.vlgmr.msra.gmra.mxu3 %vm342_vm9, %v1671_v40 }
 0x3f0   : > { %v1670_v1 = vld [vmem:[#allocation2 + $0x28] sm:$0xff] }
 0x3f1   : > { %1715 = vmatpush.msra.mxu1 %v1670_v1 }
 0x3f3   : > { %1716 = vmatpush.msra.mxu1 %v2483_v16 }
 0x3f4   : > { %1812 = vmatmul.msk.f32.vlgmr.msra.gmra.mxu1 %vm342_vm9, %v1671_v40 }
 0x46d   : > { %v1698_v17 = vpop.f32.mrf.mxu3 }
 0x46e   : > { %v1699_v23 = vadd.f32 %v1698_v17, %v1676_v18 }
 0x470   : > { %v1728_v26 = vadd.f32 %v1724_v28, %v1699_v23 }
 0x471   : > { %v1718_v19 = vpop.f32.mrf.mxu1 }
 0x472   : > { %v1719_v24 = vadd.f32 %v1718_v19, %v1676_v18 }
 0x474   : > { %v1729_v0 = vadd.f32 %v1725_v21, %v1719_v24 }
 0x476   : > { %v1732_v14 = vrot.slane %v1729_v0, 4 }
 0x478   : > { %v1734_v37 = vsel %vm1733_vm12, %v1728_v26, %v1732_v14 }
 0x479   : > { %1736 = vst [vmem:[%s224_s28] sm:$0xff] %v1734_v37 }
 0x47a PF: > { %s15_s18 = sadd.s32 1, %s2151_s18  }
 0x47b   : > { %p12_p4 = scmp.ge.s32.totalorder %s15_s18, 4  }
 0x47d   :  { %14 = sbr.rel (!%p12_p4) target bundleno = 1 (0x1), region = 74 }

</bundles_post_ra>
